<compile_context>
chip_gen: v7x
topology: tpu7x:2x2x1
jax: 0.10.0
libtpu: 0.0.40
codegen_flags: <defaults>
</compile_context>

<pallas_src>
import jax
import jax.numpy as jnp
from jax.experimental import pallas as pl
from jax.experimental.pallas import tpu as pltpu

# ---- module hyper-parameters (small, synthetic) ----
MEM_DIM = 32                         # mem_dim
LAYERS = 4                           # layers
HEAD_DIM = MEM_DIM // LAYERS         # head_dim = 8
N_NODE = 8                           # number_node
BATCH = 8                            # batch (BT = 4 per grid step, 2 grid steps)
TAIL = HEAD_DIM * LAYERS             # width of concat(output_list) == MEM_DIM
D_TOT = MEM_DIM + TAIL               # padded feature width (= 64)


# ---------------------------------------------------------------------------
# Kernel: one grid step = BT batch elements.  Everything for a step lives in
# VMEM/vregs; the layer loop is unrolled at trace time (LAYERS is a constant).
# ---------------------------------------------------------------------------
def inter_sentence_gcn_kernel(x_ref, adj_ref, w_stack_ref, wn_ref, wo_ref,
                              bias_ref, out_ref):
    BT, N, D = x_ref.shape
    BN = BT * N

    x = x_ref[...]                      # [BT, N, D]
    adj = adj_ref[...]                  # [BT, N, N]
    wn = wn_ref[...]                    # [N, N]      linear_node (pre-transposed)
    wo = wo_ref[...]                    # [D_TOT, D]  linear_output, replicated rows

    # ---- hoisted loop invariants ----
    bn_b = jnp.broadcast_to(bias_ref[LAYERS:LAYERS + 1, 0:N], (BN, N))
    bo = bias_ref[LAYERS + 1:LAYERS + 2, 0:D]                    # [1, D]

    # denom = adj.sum(2).unsqueeze(2); 1/denom hoisted onto the EUP.
    denom = jnp.sum(adj, axis=2, keepdims=True)                  # [BT, N, 1]
    inv_denom = jnp.broadcast_to(pl.reciprocal(denom, approx=True),
                                 (BT, N, D_TOT))                 # hoisted broadcast

    # Zero-padded feature buffer (traced value): [:, :, :D] = x, tail zero.
    outputs = jnp.concatenate(
        [x, jnp.zeros((BT, N, D_TOT - D), jnp.float32)], axis=2)  # [BT, N, D_TOT]

    for i in range(LAYERS):
        w_i = w_stack_ref[i]                    # [D_TOT, D_TOT] padded rows+cols
        b2_i = bias_ref[i:i + 1, :]             # [1, D_TOT], == 2*b_i at its slot

        # relative_score = outputs @ outputs^T    (per-batch; zero tail is exact)
        rel = jnp.einsum("bnd,bmd->bnm", outputs, outputs,
                         preferred_element_type=jnp.float32)     # [BT, N, N]

        # linear_node + softmax, batch-fused on [BN, N]
        rel = jnp.dot(rel.reshape(BN, N), wn,
                      preferred_element_type=jnp.float32) + bn_b
        rel = rel - jnp.max(rel, axis=-1, keepdims=True)
        rel = jnp.exp(rel)
        # exact reciprocal for the softmax path (errors compound through adj)
        rel = rel * pl.reciprocal(jnp.sum(rel, axis=-1, keepdims=True), approx=False)
        rel = rel.reshape(BT, N, N)

        # adj <- adj @ rel ; Ax = adj @ outputs   (inherently per-batch)
        adj = jnp.einsum("bnm,bmk->bnk", adj, rel,
                         preferred_element_type=jnp.float32)     # [BT, N, N]
        Ax = jnp.einsum("bnm,bmd->bnd", adj, outputs,
                        preferred_element_type=jnp.float32)      # [BT, N, D_TOT]

        # Fused: W_i(Ax) + W_i(outputs) == (Ax + outputs) @ w_i + 2*b_i.
        # w_i/b2_i are zero outside layer i's output column slot, so the update
        # below only fills the new HEAD_DIM columns; everything else is + 0.
        AxW = jnp.dot((Ax + outputs).reshape(BN, D_TOT), w_i,
                      preferred_element_type=jnp.float32) + b2_i  # [BN, D_TOT]
        gAxW = jnp.maximum(AxW.reshape(BT, N, D_TOT) * inv_denom, 0.0)

        # gcn_drop: Dropout(0.1) is identity at inference
        outputs = outputs + gAxW

    # out = linear_output(concat(output_list) + gcn_inputs)
    # wo_full = [wo ; wo], so outputs @ wo_full == (x + tail) @ wo.
    out = jnp.dot(outputs.reshape(BN, D_TOT), wo,
                  preferred_element_type=jnp.float32) + bo        # [BN, D]
    out_ref[...] = out.reshape(BT, N, D)


# ---------------------------------------------------------------------------
# Wrapper: BT batches per grid step; weights broadcast as full untiled blocks.
# ---------------------------------------------------------------------------
def inter_sentence_gcn(gcn_inputs, adj, packed, *, batch_block=None):
    B, N, D = gcn_inputs.shape
    if batch_block is None:
        # keep >= 2 grid steps ("parallel") so v7x's two TensorCores both work
        batch_block = max(1, B // 2)
    assert B % batch_block == 0
    BT = batch_block
    grid = (B // BT,)

    w_stack = packed["w_stack"]        # [LAYERS, D_TOT, D_TOT]
    wn = packed["wn"]                  # [N, N]
    wo_full = packed["wo_full"]        # [D_TOT, D]
    bias_pack = packed["bias_pack"]    # [LAYERS + 2, D_TOT]

    # advisory cost estimate (helps XLA schedule around the call)
    flops_layer = (2 * N * N * D_TOT          # outputs @ outputs^T
                   + 2 * N * N * N            # linear_node
                   + 2 * N * N * N            # adj @ rel
                   + 2 * N * N * D_TOT        # adj @ outputs
                   + 2 * N * D_TOT * D_TOT)   # fused layer linear
    flops = B * (LAYERS * flops_layer + 2 * N * D_TOT * D)
    transcendentals = B * LAYERS * N * N
    bytes_accessed = 4 * (gcn_inputs.size + adj.size + B * N * D
                          + w_stack.size + wn.size + wo_full.size
                          + bias_pack.size)
    cost = pl.CostEstimate(flops=flops, transcendentals=transcendentals,
                           bytes_accessed=bytes_accessed)

    return pl.pallas_call(
        inter_sentence_gcn_kernel,
        out_shape=jax.ShapeDtypeStruct((B, N, D), jnp.float32),
        grid=grid,
        in_specs=[
            pl.BlockSpec((BT, N, D), lambda g: (g, 0, 0)),       # gcn_inputs
            pl.BlockSpec((BT, N, N), lambda g: (g, 0, 0)),       # adj
            pl.BlockSpec(w_stack.shape, lambda g: (0, 0, 0)),    # stacked layer W
            pl.BlockSpec(wn.shape, lambda g: (0, 0)),            # linear_node W
            pl.BlockSpec(wo_full.shape, lambda g: (0, 0)),       # linear_output W
            pl.BlockSpec(bias_pack.shape, lambda g: (0, 0)),     # packed biases
        ],
        out_specs=pl.BlockSpec((BT, N, D), lambda g: (g, 0, 0)),
        compiler_params=pltpu.CompilerParams(dimension_semantics=("parallel",)),
        cost_estimate=cost,
    )(gcn_inputs, adj, w_stack, wn, wo_full, bias_pack)


# ---------------------------------------------------------------------------
# Deterministic parameter construction (synthetic; mimics weight_norm(dim=None)).
# ---------------------------------------------------------------------------
def _weight_norm_effective(v, g):
    # PyTorch weight_norm with dim=None: W = g * v / ||v||_F  (scalar g)
    return g * v / jnp.sqrt(jnp.sum(v * v))


def make_params(key):
    keys = jax.random.split(key, 4 + 2 * LAYERS + 4)
    k = iter(keys)

    # linear_node: Linear(N, N) -> stored transposed [in, out]
    wn = jax.random.normal(next(k), (N_NODE, N_NODE), jnp.float32) * 0.2
    bn = jax.random.normal(next(k), (1, N_NODE), jnp.float32) * 0.1

    layer_ws, layer_bs = [], []
    for i in range(LAYERS):
        in_dim = MEM_DIM + HEAD_DIM * i
        v = jax.random.normal(next(k), (in_dim, HEAD_DIM), jnp.float32) * 0.2
        g = 1.0 + 0.1 * i
        layer_ws.append(_weight_norm_effective(v, g))
        layer_bs.append(jax.random.normal(next(k), (1, HEAD_DIM), jnp.float32) * 0.1)

    # linear_output: weight_norm Linear(D, D) -> transposed [in, out]
    vo = jax.random.normal(next(k), (MEM_DIM, MEM_DIM), jnp.float32) * 0.2
    wo = _weight_norm_effective(vo, 1.5)
    bo = jax.random.normal(next(k), (1, MEM_DIM), jnp.float32) * 0.1

    return {"wn": wn, "bn": bn, "layer_ws": layer_ws,
            "layer_bs": layer_bs, "wo": wo, "bo": bo}


def pack_params(params):
    """Consolidate the 12 operands into 4 kernel operands."""
    assert TAIL == MEM_DIM and D_TOT == 2 * MEM_DIM

    # Layer weights zero-padded on both dims and stacked: [LAYERS, D_TOT, D_TOT].
    # Rows beyond the layer's input width are zero; columns outside the layer's
    # output slot [D + h*i, D + h*(i+1)) are zero.
    w_stack = jnp.zeros((LAYERS, D_TOT, D_TOT), jnp.float32)
    for i, w in enumerate(params["layer_ws"]):
        in_dim = MEM_DIM + HEAD_DIM * i
        col0 = MEM_DIM + HEAD_DIM * i
        w_stack = w_stack.at[i, :in_dim, col0:col0 + HEAD_DIM].set(w)

    # All biases packed into one [LAYERS + 2, D_TOT] array:
    #   rows 0..L-1 : 2 * layer bias placed at the layer's output column slot
    #   row  L      : linear_node bias (first N columns)
    #   row  L+1    : linear_output bias (first D columns)
    bias_pack = jnp.zeros((LAYERS + 2, D_TOT), jnp.float32)
    for i, b in enumerate(params["layer_bs"]):
        col0 = MEM_DIM + HEAD_DIM * i
        bias_pack = bias_pack.at[i, col0:col0 + HEAD_DIM].set(2.0 * b[0])
    bias_pack = bias_pack.at[LAYERS, :N_NODE].set(params["bn"][0])
    bias_pack = bias_pack.at[LAYERS + 1, :MEM_DIM].set(params["bo"][0])

    # linear_output weight replicated over the x-columns and tail-columns of the
    # padded feature buffer, so outputs @ wo_full == (x + concat(output_list)) @ wo.
    wo_full = jnp.concatenate([params["wo"], params["wo"]], axis=0)  # [D_TOT, D]

    return {"w_stack": w_stack, "wn": params["wn"], "wo_full": wo_full,
            "bias_pack": bias_pack}


# ---------------------------------------------------------------------------
# Plain-JAX reference (same math, batched) for a correctness check.
# ---------------------------------------------------------------------------
def reference(gcn_inputs, adj, params):
    denom = jnp.sum(adj, axis=2, keepdims=True)
    outputs = gcn_inputs
    cache = [outputs]
    out_list = []
    for i in range(LAYERS):
        rel = jnp.einsum("bnd,bmd->bnm", outputs, outputs)
        rel = jnp.einsum("bnm,mk->bnk", rel, params["wn"]) + params["bn"][None]
        rel = jax.nn.softmax(rel, axis=-1)
        adj = jnp.einsum("bnm,bmk->bnk", adj, rel)
        Ax = jnp.einsum("bnm,bmd->bnd", adj, outputs)
        w_i, b_i = params["layer_ws"][i], params["layer_bs"][i]
        AxW = (Ax @ w_i + b_i[None]) + (outputs @ w_i + b_i[None])
        AxW = AxW / denom
        gAxW = jnp.maximum(AxW, 0.0)
        cache.append(gAxW)
        outputs = jnp.concatenate(cache, axis=2)
        out_list.append(gAxW)
    gcn_out = jnp.concatenate(out_list, axis=2) + gcn_inputs
    return gcn_out @ params["wo"] + params["bo"][None]


if __name__ == "__main__":
    key = jax.random.PRNGKey(0)
    k_x, k_adj, k_p = jax.random.split(key, 3)

    gcn_inputs = jax.random.normal(k_x, (BATCH, N_NODE, MEM_DIM), jnp.float32)
    # nonnegative adjacency with self-loops so denom > 0
    adj = (jax.random.uniform(k_adj, (BATCH, N_NODE, N_NODE)) > 0.5).astype(jnp.float32)
    adj = adj + jnp.eye(N_NODE, dtype=jnp.float32)[None]

    params = make_params(k_p)
    packed = pack_params(params)

    out = jax.block_until_ready(inter_sentence_gcn(gcn_inputs, adj, packed))
    ref = jax.block_until_ready(reference(gcn_inputs, adj, params))

    if not jnp.allclose(out, ref, rtol=2e-2, atol=2e-2):
        raise AssertionError(
            f"mismatch: max abs diff = {float(jnp.max(jnp.abs(out - ref)))}")

    print("KERNEL_OK")
</pallas_src>

<mosaic_0001>
module attributes {stable_mosaic.version = 11 : i64} {
  func.func @inter_sentence_gcn_kernel(%arg0: i32, %arg1: memref<4x8x32xf32, #tpu.memory_space<vmem>>, %arg2: memref<4x8x8xf32, #tpu.memory_space<vmem>>, %arg3: memref<4x64x64xf32, #tpu.memory_space<vmem>>, %arg4: memref<8x8xf32, #tpu.memory_space<vmem>>, %arg5: memref<64x32xf32, #tpu.memory_space<vmem>>, %arg6: memref<6x64xf32, #tpu.memory_space<vmem>>, %arg7: memref<4x8x32xf32, #tpu.memory_space<vmem>>) attributes {dimension_semantics = [#tpu.dimension_semantics<parallel>], iteration_bounds = array<i64: 2>, scalar_prefetch = 0 : i64, scratch_operands = 0 : i64, tpu.core_type = #tpu.core_type<tc>, window_params = [{transform_indices = @transform_0, window_bounds = array<i64: 4, 8, 32>}, {transform_indices = @transform_1, window_bounds = array<i64: 4, 8, 8>}, {pipeline_mode = #tpu.pipeline_mode<synchronous>, transform_indices = @transform_2, window_bounds = array<i64: 4, 64, 64>}, {pipeline_mode = #tpu.pipeline_mode<synchronous>, transform_indices = @transform_3, window_bounds = array<i64: 8, 8>}, {pipeline_mode = #tpu.pipeline_mode<synchronous>, transform_indices = @transform_4, window_bounds = array<i64: 64, 32>}, {pipeline_mode = #tpu.pipeline_mode<synchronous>, transform_indices = @transform_5, window_bounds = array<i64: 6, 64>}, {transform_indices = @transform_6, window_bounds = array<i64: 4, 8, 32>}]} {
    %c0 = arith.constant 0 : index
    %c0_0 = arith.constant 0 : index
    %c0_1 = arith.constant 0 : index
    %0 = vector.load %arg1[%c0, %c0_0, %c0_1] : memref<4x8x32xf32, #tpu.memory_space<vmem>>, vector<4x8x32xf32>
    %c0_2 = arith.constant 0 : index
    %c0_3 = arith.constant 0 : index
    %c0_4 = arith.constant 0 : index
    %1 = vector.load %arg2[%c0_2, %c0_3, %c0_4] : memref<4x8x8xf32, #tpu.memory_space<vmem>>, vector<4x8x8xf32>
    %c0_5 = arith.constant 0 : index
    %c0_6 = arith.constant 0 : index
    %2 = vector.load %arg4[%c0_5, %c0_6] : memref<8x8xf32, #tpu.memory_space<vmem>>, vector<8x8xf32>
    %c0_7 = arith.constant 0 : index
    %c0_8 = arith.constant 0 : index
    %3 = vector.load %arg5[%c0_7, %c0_8] : memref<64x32xf32, #tpu.memory_space<vmem>>, vector<64x32xf32>
    %c4 = arith.constant 4 : index
    %c0_9 = arith.constant 0 : index
    %4 = vector.load %arg6[%c4, %c0_9] : memref<6x64xf32, #tpu.memory_space<vmem>>, vector<1x8xf32>
    %5 = vector.shape_cast %4 : vector<1x8xf32> to vector<1x8xf32>
    %6 = vector.broadcast %5 : vector<1x8xf32> to vector<32x8xf32>
    %c5 = arith.constant 5 : index
    %c0_10 = arith.constant 0 : index
    %7 = vector.load %arg6[%c5, %c0_10] : memref<6x64xf32, #tpu.memory_space<vmem>>, vector<1x32xf32>
    %cst = arith.constant dense<0.000000e+00> : vector<4x8xf32>
    %8 = vector.multi_reduction <add>, %1, %cst [2] : vector<4x8x8xf32> to vector<4x8xf32>
    %9 = vector.shape_cast %8 : vector<4x8xf32> to vector<4x8x1xf32>
    %10 = tpu.reciprocal %9 {approx = true} : vector<4x8x1xf32> -> vector<4x8x1xf32>
    %11 = vector.shape_cast %10 : vector<4x8x1xf32> to vector<4x8x1xf32>
    %12 = vector.broadcast %11 : vector<4x8x1xf32> to vector<4x8x64xf32>
    %cst_11 = arith.constant 0.000000e+00 : f32
    %13 = vector.broadcast %cst_11 : f32 to vector<4x8x32xf32>
    %14 = tpu.concatenate %0, %13 in 2 : vector<4x8x32xf32>, vector<4x8x32xf32> -> vector<4x8x64xf32>
    %c0_12 = arith.constant 0 : index
    %c0_13 = arith.constant 0 : index
    %c0_14 = arith.constant 0 : index
    %15 = vector.load %arg3[%c0_12, %c0_13, %c0_14] : memref<4x64x64xf32, #tpu.memory_space<vmem>>, vector<1x64x64xf32>
    %16 = vector.shape_cast %15 : vector<1x64x64xf32> to vector<64x64xf32>
    %c0_15 = arith.constant 0 : index
    %c0_16 = arith.constant 0 : index
    %17 = vector.load %arg6[%c0_15, %c0_16] : memref<6x64xf32, #tpu.memory_space<vmem>>, vector<1x64xf32>
    "tpu.trace_start"() <{level = 10 : i32, message = "bnd,bmd->bnm"}> : () -> ()
    %cst_17 = arith.constant dense<0.000000e+00> : vector<4x8x8xf32>
    %18 = tpu.matmul %14, %14, %cst_17 {dimension_numbers = #tpu.dot_dimension_numbers<[2], [2], [1], [1], [0, 0, 0, 1, 1, 1], [0], [0]>} : vector<4x8x64xf32>, vector<4x8x64xf32>, vector<4x8x8xf32> -> vector<4x8x8xf32>
    "tpu.trace_stop"() : () -> ()
    %19 = vector.shape_cast %18 : vector<4x8x8xf32> to vector<32x8xf32>
    %cst_18 = arith.constant dense<0.000000e+00> : vector<32x8xf32>
    %20 = tpu.matmul %19, %2, %cst_18 {dimension_numbers = #tpu.dot_dimension_numbers<[1], [0], [0], [1], [0, 0, 1, 1], [], []>} : vector<32x8xf32>, vector<8x8xf32>, vector<32x8xf32> -> vector<32x8xf32>
    %21 = arith.addf %20, %6 : vector<32x8xf32>
    %cst_19 = arith.constant dense<0xFF800000> : vector<32xf32>
    %22 = vector.multi_reduction <maximumf>, %21, %cst_19 [1] : vector<32x8xf32> to vector<32xf32>
    %23 = vector.shape_cast %22 : vector<32xf32> to vector<32x1xf32>
    %24 = vector.broadcast %23 : vector<32x1xf32> to vector<32x8xf32>
    %25 = arith.subf %21, %24 : vector<32x8xf32>
    %26 = math.exp %25 : vector<32x8xf32>
    %cst_20 = arith.constant dense<0.000000e+00> : vector<32xf32>
    %27 = vector.multi_reduction <add>, %26, %cst_20 [1] : vector<32x8xf32> to vector<32xf32>
    %28 = vector.shape_cast %27 : vector<32xf32> to vector<32x1xf32>
    %29 = tpu.reciprocal %28 : vector<32x1xf32> -> vector<32x1xf32>
    %30 = vector.broadcast %29 : vector<32x1xf32> to vector<32x8xf32>
    %31 = arith.mulf %26, %30 : vector<32x8xf32>
    %32 = vector.shape_cast %31 : vector<32x8xf32> to vector<4x8x8xf32>
    "tpu.trace_start"() <{level = 10 : i32, message = "bnm,bmk->bnk"}> : () -> ()
    %cst_21 = arith.constant dense<0.000000e+00> : vector<4x8x8xf32>
    %33 = tpu.matmul %1, %32, %cst_21 {dimension_numbers = #tpu.dot_dimension_numbers<[2], [1], [1], [2], [0, 0, 0, 1, 1, 2], [0], [0]>} : vector<4x8x8xf32>, vector<4x8x8xf32>, vector<4x8x8xf32> -> vector<4x8x8xf32>
    "tpu.trace_stop"() : () -> ()
    "tpu.trace_start"() <{level = 10 : i32, message = "bnm,bmd->bnd"}> : () -> ()
    %cst_22 = arith.constant dense<0.000000e+00> : vector<4x8x64xf32>
    %34 = tpu.matmul %33, %14, %cst_22 {dimension_numbers = #tpu.dot_dimension_numbers<[2], [1], [1], [2], [0, 0, 0, 1, 1, 2], [0], [0]>} : vector<4x8x8xf32>, vector<4x8x64xf32>, vector<4x8x64xf32> -> vector<4x8x64xf32>
    "tpu.trace_stop"() : () -> ()
    %35 = arith.addf %34, %14 : vector<4x8x64xf32>
    %36 = vector.shape_cast %35 : vector<4x8x64xf32> to vector<32x64xf32>
    %cst_23 = arith.constant dense<0.000000e+00> : vector<32x64xf32>
    %37 = tpu.matmul %36, %16, %cst_23 {dimension_numbers = #tpu.dot_dimension_numbers<[1], [0], [0], [1], [0, 0, 1, 1], [], []>} : vector<32x64xf32>, vector<64x64xf32>, vector<32x64xf32> -> vector<32x64xf32>
    %38 = vector.broadcast %17 : vector<1x64xf32> to vector<32x64xf32>
    %39 = arith.addf %37, %38 : vector<32x64xf32>
    %40 = vector.shape_cast %39 : vector<32x64xf32> to vector<4x8x64xf32>
    %41 = arith.mulf %40, %12 : vector<4x8x64xf32>
    %cst_24 = arith.constant 0.000000e+00 : f32
    %42 = vector.broadcast %cst_24 : f32 to vector<4x8x64xf32>
    %43 = arith.maximumf %41, %42 : vector<4x8x64xf32>
    %44 = arith.addf %14, %43 : vector<4x8x64xf32>
    %c1 = arith.constant 1 : index
    %c0_25 = arith.constant 0 : index
    %c0_26 = arith.constant 0 : index
    %45 = vector.load %arg3[%c1, %c0_25, %c0_26] : memref<4x64x64xf32, #tpu.memory_space<vmem>>, vector<1x64x64xf32>
    %46 = vector.shape_cast %45 : vector<1x64x64xf32> to vector<64x64xf32>
    %c1_27 = arith.constant 1 : index
    %c0_28 = arith.constant 0 : index
    %47 = vector.load %arg6[%c1_27, %c0_28] : memref<6x64xf32, #tpu.memory_space<vmem>>, vector<1x64xf32>
    "tpu.trace_start"() <{level = 10 : i32, message = "bnd,bmd->bnm"}> : () -> ()
    %cst_29 = arith.constant dense<0.000000e+00> : vector<4x8x8xf32>
    %48 = tpu.matmul %44, %44, %cst_29 {dimension_numbers = #tpu.dot_dimension_numbers<[2], [2], [1], [1], [0, 0, 0, 1, 1, 1], [0], [0]>} : vector<4x8x64xf32>, vector<4x8x64xf32>, vector<4x8x8xf32> -> vector<4x8x8xf32>
    "tpu.trace_stop"() : () -> ()
    %49 = vector.shape_cast %48 : vector<4x8x8xf32> to vector<32x8xf32>
    %cst_30 = arith.constant dense<0.000000e+00> : vector<32x8xf32>
    %50 = tpu.matmul %49, %2, %cst_30 {dimension_numbers = #tpu.dot_dimension_numbers<[1], [0], [0], [1], [0, 0, 1, 1], [], []>} : vector<32x8xf32>, vector<8x8xf32>, vector<32x8xf32> -> vector<32x8xf32>
    %51 = arith.addf %50, %6 : vector<32x8xf32>
    %cst_31 = arith.constant dense<0xFF800000> : vector<32xf32>
    %52 = vector.multi_reduction <maximumf>, %51, %cst_31 [1] : vector<32x8xf32> to vector<32xf32>
    %53 = vector.shape_cast %52 : vector<32xf32> to vector<32x1xf32>
    %54 = vector.broadcast %53 : vector<32x1xf32> to vector<32x8xf32>
    %55 = arith.subf %51, %54 : vector<32x8xf32>
    %56 = math.exp %55 : vector<32x8xf32>
    %cst_32 = arith.constant dense<0.000000e+00> : vector<32xf32>
    %57 = vector.multi_reduction <add>, %56, %cst_32 [1] : vector<32x8xf32> to vector<32xf32>
    %58 = vector.shape_cast %57 : vector<32xf32> to vector<32x1xf32>
    %59 = tpu.reciprocal %58 : vector<32x1xf32> -> vector<32x1xf32>
    %60 = vector.broadcast %59 : vector<32x1xf32> to vector<32x8xf32>
    %61 = arith.mulf %56, %60 : vector<32x8xf32>
    %62 = vector.shape_cast %61 : vector<32x8xf32> to vector<4x8x8xf32>
    "tpu.trace_start"() <{level = 10 : i32, message = "bnm,bmk->bnk"}> : () -> ()
    %cst_33 = arith.constant dense<0.000000e+00> : vector<4x8x8xf32>
    %63 = tpu.matmul %33, %62, %cst_33 {dimension_numbers = #tpu.dot_dimension_numbers<[2], [1], [1], [2], [0, 0, 0, 1, 1, 2], [0], [0]>} : vector<4x8x8xf32>, vector<4x8x8xf32>, vector<4x8x8xf32> -> vector<4x8x8xf32>
    "tpu.trace_stop"() : () -> ()
    "tpu.trace_start"() <{level = 10 : i32, message = "bnm,bmd->bnd"}> : () -> ()
    %cst_34 = arith.constant dense<0.000000e+00> : vector<4x8x64xf32>
    %64 = tpu.matmul %63, %44, %cst_34 {dimension_numbers = #tpu.dot_dimension_numbers<[2], [1], [1], [2], [0, 0, 0, 1, 1, 2], [0], [0]>} : vector<4x8x8xf32>, vector<4x8x64xf32>, vector<4x8x64xf32> -> vector<4x8x64xf32>
    "tpu.trace_stop"() : () -> ()
    %65 = arith.addf %64, %44 : vector<4x8x64xf32>
    %66 = vector.shape_cast %65 : vector<4x8x64xf32> to vector<32x64xf32>
    %cst_35 = arith.constant dense<0.000000e+00> : vector<32x64xf32>
    %67 = tpu.matmul %66, %46, %cst_35 {dimension_numbers = #tpu.dot_dimension_numbers<[1], [0], [0], [1], [0, 0, 1, 1], [], []>} : vector<32x64xf32>, vector<64x64xf32>, vector<32x64xf32> -> vector<32x64xf32>
    %68 = vector.broadcast %47 : vector<1x64xf32> to vector<32x64xf32>
    %69 = arith.addf %67, %68 : vector<32x64xf32>
    %70 = vector.shape_cast %69 : vector<32x64xf32> to vector<4x8x64xf32>
    %71 = arith.mulf %70, %12 : vector<4x8x64xf32>
    %cst_36 = arith.constant 0.000000e+00 : f32
    %72 = vector.broadcast %cst_36 : f32 to vector<4x8x64xf32>
    %73 = arith.maximumf %71, %72 : vector<4x8x64xf32>
    %74 = arith.addf %44, %73 : vector<4x8x64xf32>
    %c2 = arith.constant 2 : index
    %c0_37 = arith.constant 0 : index
    %c0_38 = arith.constant 0 : index
    %75 = vector.load %arg3[%c2, %c0_37, %c0_38] : memref<4x64x64xf32, #tpu.memory_space<vmem>>, vector<1x64x64xf32>
    %76 = vector.shape_cast %75 : vector<1x64x64xf32> to vector<64x64xf32>
    %c2_39 = arith.constant 2 : index
    %c0_40 = arith.constant 0 : index
    %77 = vector.load %arg6[%c2_39, %c0_40] : memref<6x64xf32, #tpu.memory_space<vmem>>, vector<1x64xf32>
    "tpu.trace_start"() <{level = 10 : i32, message = "bnd,bmd->bnm"}> : () -> ()
    %cst_41 = arith.constant dense<0.000000e+00> : vector<4x8x8xf32>
    %78 = tpu.matmul %74, %74, %cst_41 {dimension_numbers = #tpu.dot_dimension_numbers<[2], [2], [1], [1], [0, 0, 0, 1, 1, 1], [0], [0]>} : vector<4x8x64xf32>, vector<4x8x64xf32>, vector<4x8x8xf32> -> vector<4x8x8xf32>
    "tpu.trace_stop"() : () -> ()
    %79 = vector.shape_cast %78 : vector<4x8x8xf32> to vector<32x8xf32>
    %cst_42 = arith.constant dense<0.000000e+00> : vector<32x8xf32>
    %80 = tpu.matmul %79, %2, %cst_42 {dimension_numbers = #tpu.dot_dimension_numbers<[1], [0], [0], [1], [0, 0, 1, 1], [], []>} : vector<32x8xf32>, vector<8x8xf32>, vector<32x8xf32> -> vector<32x8xf32>
    %81 = arith.addf %80, %6 : vector<32x8xf32>
    %cst_43 = arith.constant dense<0xFF800000> : vector<32xf32>
    %82 = vector.multi_reduction <maximumf>, %81, %cst_43 [1] : vector<32x8xf32> to vector<32xf32>
    %83 = vector.shape_cast %82 : vector<32xf32> to vector<32x1xf32>
    %84 = vector.broadcast %83 : vector<32x1xf32> to vector<32x8xf32>
    %85 = arith.subf %81, %84 : vector<32x8xf32>
    %86 = math.exp %85 : vector<32x8xf32>
    %cst_44 = arith.constant dense<0.000000e+00> : vector<32xf32>
    %87 = vector.multi_reduction <add>, %86, %cst_44 [1] : vector<32x8xf32> to vector<32xf32>
    %88 = vector.shape_cast %87 : vector<32xf32> to vector<32x1xf32>
    %89 = tpu.reciprocal %88 : vector<32x1xf32> -> vector<32x1xf32>
    %90 = vector.broadcast %89 : vector<32x1xf32> to vector<32x8xf32>
    %91 = arith.mulf %86, %90 : vector<32x8xf32>
    %92 = vector.shape_cast %91 : vector<32x8xf32> to vector<4x8x8xf32>
    "tpu.trace_start"() <{level = 10 : i32, message = "bnm,bmk->bnk"}> : () -> ()
    %cst_45 = arith.constant dense<0.000000e+00> : vector<4x8x8xf32>
    %93 = tpu.matmul %63, %92, %cst_45 {dimension_numbers = #tpu.dot_dimension_numbers<[2], [1], [1], [2], [0, 0, 0, 1, 1, 2], [0], [0]>} : vector<4x8x8xf32>, vector<4x8x8xf32>, vector<4x8x8xf32> -> vector<4x8x8xf32>
    "tpu.trace_stop"() : () -> ()
    "tpu.trace_start"() <{level = 10 : i32, message = "bnm,bmd->bnd"}> : () -> ()
    %cst_46 = arith.constant dense<0.000000e+00> : vector<4x8x64xf32>
    %94 = tpu.matmul %93, %74, %cst_46 {dimension_numbers = #tpu.dot_dimension_numbers<[2], [1], [1], [2], [0, 0, 0, 1, 1, 2], [0], [0]>} : vector<4x8x8xf32>, vector<4x8x64xf32>, vector<4x8x64xf32> -> vector<4x8x64xf32>
    "tpu.trace_stop"() : () -> ()
    %95 = arith.addf %94, %74 : vector<4x8x64xf32>
    %96 = vector.shape_cast %95 : vector<4x8x64xf32> to vector<32x64xf32>
    %cst_47 = arith.constant dense<0.000000e+00> : vector<32x64xf32>
    %97 = tpu.matmul %96, %76, %cst_47 {dimension_numbers = #tpu.dot_dimension_numbers<[1], [0], [0], [1], [0, 0, 1, 1], [], []>} : vector<32x64xf32>, vector<64x64xf32>, vector<32x64xf32> -> vector<32x64xf32>
    %98 = vector.broadcast %77 : vector<1x64xf32> to vector<32x64xf32>
    %99 = arith.addf %97, %98 : vector<32x64xf32>
    %100 = vector.shape_cast %99 : vector<32x64xf32> to vector<4x8x64xf32>
    %101 = arith.mulf %100, %12 : vector<4x8x64xf32>
    %cst_48 = arith.constant 0.000000e+00 : f32
    %102 = vector.broadcast %cst_48 : f32 to vector<4x8x64xf32>
    %103 = arith.maximumf %101, %102 : vector<4x8x64xf32>
    %104 = arith.addf %74, %103 : vector<4x8x64xf32>
    %c3 = arith.constant 3 : index
    %c0_49 = arith.constant 0 : index
    %c0_50 = arith.constant 0 : index
    %105 = vector.load %arg3[%c3, %c0_49, %c0_50] : memref<4x64x64xf32, #tpu.memory_space<vmem>>, vector<1x64x64xf32>
    %106 = vector.shape_cast %105 : vector<1x64x64xf32> to vector<64x64xf32>
    %c3_51 = arith.constant 3 : index
    %c0_52 = arith.constant 0 : index
    %107 = vector.load %arg6[%c3_51, %c0_52] : memref<6x64xf32, #tpu.memory_space<vmem>>, vector<1x64xf32>
    "tpu.trace_start"() <{level = 10 : i32, message = "bnd,bmd->bnm"}> : () -> ()
    %cst_53 = arith.constant dense<0.000000e+00> : vector<4x8x8xf32>
    %108 = tpu.matmul %104, %104, %cst_53 {dimension_numbers = #tpu.dot_dimension_numbers<[2], [2], [1], [1], [0, 0, 0, 1, 1, 1], [0], [0]>} : vector<4x8x64xf32>, vector<4x8x64xf32>, vector<4x8x8xf32> -> vector<4x8x8xf32>
    "tpu.trace_stop"() : () -> ()
    %109 = vector.shape_cast %108 : vector<4x8x8xf32> to vector<32x8xf32>
    %cst_54 = arith.constant dense<0.000000e+00> : vector<32x8xf32>
    %110 = tpu.matmul %109, %2, %cst_54 {dimension_numbers = #tpu.dot_dimension_numbers<[1], [0], [0], [1], [0, 0, 1, 1], [], []>} : vector<32x8xf32>, vector<8x8xf32>, vector<32x8xf32> -> vector<32x8xf32>
    %111 = arith.addf %110, %6 : vector<32x8xf32>
    %cst_55 = arith.constant dense<0xFF800000> : vector<32xf32>
    %112 = vector.multi_reduction <maximumf>, %111, %cst_55 [1] : vector<32x8xf32> to vector<32xf32>
    %113 = vector.shape_cast %112 : vector<32xf32> to vector<32x1xf32>
    %114 = vector.broadcast %113 : vector<32x1xf32> to vector<32x8xf32>
    %115 = arith.subf %111, %114 : vector<32x8xf32>
    %116 = math.exp %115 : vector<32x8xf32>
    %cst_56 = arith.constant dense<0.000000e+00> : vector<32xf32>
    %117 = vector.multi_reduction <add>, %116, %cst_56 [1] : vector<32x8xf32> to vector<32xf32>
    %118 = vector.shape_cast %117 : vector<32xf32> to vector<32x1xf32>
    %119 = tpu.reciprocal %118 : vector<32x1xf32> -> vector<32x1xf32>
    %120 = vector.broadcast %119 : vector<32x1xf32> to vector<32x8xf32>
    %121 = arith.mulf %116, %120 : vector<32x8xf32>
    %122 = vector.shape_cast %121 : vector<32x8xf32> to vector<4x8x8xf32>
    "tpu.trace_start"() <{level = 10 : i32, message = "bnm,bmk->bnk"}> : () -> ()
    %cst_57 = arith.constant dense<0.000000e+00> : vector<4x8x8xf32>
    %123 = tpu.matmul %93, %122, %cst_57 {dimension_numbers = #tpu.dot_dimension_numbers<[2], [1], [1], [2], [0, 0, 0, 1, 1, 2], [0], [0]>} : vector<4x8x8xf32>, vector<4x8x8xf32>, vector<4x8x8xf32> -> vector<4x8x8xf32>
    "tpu.trace_stop"() : () -> ()
    "tpu.trace_start"() <{level = 10 : i32, message = "bnm,bmd->bnd"}> : () -> ()
    %cst_58 = arith.constant dense<0.000000e+00> : vector<4x8x64xf32>
    %124 = tpu.matmul %123, %104, %cst_58 {dimension_numbers = #tpu.dot_dimension_numbers<[2], [1], [1], [2], [0, 0, 0, 1, 1, 2], [0], [0]>} : vector<4x8x8xf32>, vector<4x8x64xf32>, vector<4x8x64xf32> -> vector<4x8x64xf32>
    "tpu.trace_stop"() : () -> ()
    %125 = arith.addf %124, %104 : vector<4x8x64xf32>
    %126 = vector.shape_cast %125 : vector<4x8x64xf32> to vector<32x64xf32>
    %cst_59 = arith.constant dense<0.000000e+00> : vector<32x64xf32>
    %127 = tpu.matmul %126, %106, %cst_59 {dimension_numbers = #tpu.dot_dimension_numbers<[1], [0], [0], [1], [0, 0, 1, 1], [], []>} : vector<32x64xf32>, vector<64x64xf32>, vector<32x64xf32> -> vector<32x64xf32>
    %128 = vector.broadcast %107 : vector<1x64xf32> to vector<32x64xf32>
    %129 = arith.addf %127, %128 : vector<32x64xf32>
    %130 = vector.shape_cast %129 : vector<32x64xf32> to vector<4x8x64xf32>
    %131 = arith.mulf %130, %12 : vector<4x8x64xf32>
    %cst_60 = arith.constant 0.000000e+00 : f32
    %132 = vector.broadcast %cst_60 : f32 to vector<4x8x64xf32>
    %133 = arith.maximumf %131, %132 : vector<4x8x64xf32>
    %134 = arith.addf %104, %133 : vector<4x8x64xf32>
    %135 = vector.shape_cast %134 : vector<4x8x64xf32> to vector<32x64xf32>
    %cst_61 = arith.constant dense<0.000000e+00> : vector<32x32xf32>
    %136 = tpu.matmul %135, %3, %cst_61 {dimension_numbers = #tpu.dot_dimension_numbers<[1], [0], [0], [1], [0, 0, 1, 1], [], []>} : vector<32x64xf32>, vector<64x32xf32>, vector<32x32xf32> -> vector<32x32xf32>
    %137 = vector.broadcast %7 : vector<1x32xf32> to vector<32x32xf32>
    %138 = arith.addf %136, %137 : vector<32x32xf32>
    %139 = vector.shape_cast %138 : vector<32x32xf32> to vector<4x8x32xf32>
    %c0_62 = arith.constant 0 : index
    %c0_63 = arith.constant 0 : index
    %c0_64 = arith.constant 0 : index
    %140 = vector.load %arg7[%c0_62, %c0_63, %c0_64] : memref<4x8x32xf32, #tpu.memory_space<vmem>>, vector<4x8x32xf32>
    tpu.vector_store %arg7[%c0_62, %c0_63, %c0_64], %139 {strides = array<i32>} : memref<4x8x32xf32, #tpu.memory_space<vmem>>, vector<4x8x32xf32>,
    return
  }
  func.func @transform_0(%arg0: i32) -> (i32, i32, i32) {
    %c0_i32 = arith.constant 0 : i32
    %c0_i32_0 = arith.constant 0 : i32
    %c0_i32_1 = arith.constant 0 : i32
    return %arg0, %c0_i32, %c0_i32_0 : i32, i32, i32
  }
  func.func @transform_1(%arg0: i32) -> (i32, i32, i32) {
    %c0_i32 = arith.constant 0 : i32
    %c0_i32_0 = arith.constant 0 : i32
    %c0_i32_1 = arith.constant 0 : i32
    return %arg0, %c0_i32, %c0_i32_0 : i32, i32, i32
  }
  func.func @transform_2(%arg0: i32) -> (i32, i32, i32) {
    %c0_i32 = arith.constant 0 : i32
    %c0_i32_0 = arith.constant 0 : i32
    %c0_i32_1 = arith.constant 0 : i32
    %c0_i32_2 = arith.constant 0 : i32
    return %c0_i32, %c0_i32_0, %c0_i32_1 : i32, i32, i32
  }
  func.func @transform_3(%arg0: i32) -> (i32, i32) {
    %c0_i32 = arith.constant 0 : i32
    %c0_i32_0 = arith.constant 0 : i32
    %c0_i32_1 = arith.constant 0 : i32
    return %c0_i32, %c0_i32_0 : i32, i32
  }
  func.func @transform_4(%arg0: i32) -> (i32, i32) {
    %c0_i32 = arith.constant 0 : i32
    %c0_i32_0 = arith.constant 0 : i32
    %c0_i32_1 = arith.constant 0 : i32
    return %c0_i32, %c0_i32_0 : i32, i32
  }
  func.func @transform_5(%arg0: i32) -> (i32, i32) {
    %c0_i32 = arith.constant 0 : i32
    %c0_i32_0 = arith.constant 0 : i32
    %c0_i32_1 = arith.constant 0 : i32
    return %c0_i32, %c0_i32_0 : i32, i32
  }
  func.func @transform_6(%arg0: i32) -> (i32, i32, i32) {
    %c0_i32 = arith.constant 0 : i32
    %c0_i32_0 = arith.constant 0 : i32
    %c0_i32_1 = arith.constant 0 : i32
    return %arg0, %c0_i32, %c0_i32_0 : i32, i32, i32
  }
}

</mosaic_0001>

<bundles_post_ra>
// kernel: tpu_custom_call.1
= control target key start
LH: loop header
LB: loop body
LE: loop exit
PB: predicated region body
PF: predicated region fallthrough
CT: control target
= control target key end

     0   :  { %11 = vsyncpa [#allocation3], 0  ;;  %s6961_s0 = inlined_call_operand.vmem [shape: f32[8,8,32], index: 0, kind: input, shape index: {}]   ;;  %s6962_s1 = inlined_call_operand.hbm [shape: f32[8,8,8], index: 1, kind: input, shape index: {}]   ;;  %s6963_s2 = inlined_call_operand.hbm [shape: f32[4,64,64], index: 2, kind: input, shape index: {}]   ;;  %s6964_s3 = inlined_call_operand.vmem [shape: f32[8,8], index: 3, kind: input, shape index: {}]   ;;  %s6965_s4 = inlined_call_operand.vmem [shape: f32[64,32], index: 4, kind: input, shape index: {}]   ;;  %s6966_s5 = inlined_call_operand.vmem [shape: f32[6,64], index: 5, kind: input, shape index: {}]   ;;  %s6967_s6 = inlined_call_operand.hbm [shape: f32[8,8,32], index: 6, kind: output, shape index: {}]  }
   0x1   :  { %13 = vsyncpa [#allocation3 + $0x1], 0 }
   0x2   :  { %14 = vsyncpa [#allocation6], 0 }
   0x3   :  { %15 = vsyncpa [#allocation4], 0 }
   0x4   :  { %17 = vsyncpa [#allocation4 + $0x1], 0  ;;  %s6171_s21 = smov 0   ;;  %s6173_s22 = smov 0  }
   0x5   :  { %s6175_s23 = smov 0   ;;  %s6177_s24 = smov 0  }
   0x6 LB: > { %s6192_s25 = sadd.s32 4294967295, %s6125_s24   ;;  %s5092_s26 = sadd.s32 4294967294, %s6125_s24   ;;  %s6125_s24 = sphi %s6177_s24, %s6987_s24   ;;  %s6121_s23 = sphi %s6175_s23, %s6986_s23   ;;  %s6117_s22 = sphi %s6173_s22, %s6985_s22   ;;  %s6113_s21 = sphi %s6171_s21, %s6984_s21  }
   0x7   : > { %p69_p0 = scmp.ne.s32.totalorder %s6117_s22, %s6113_s21  ;;  %p6968_p1 = scmp.eq.s32.totalorder %s6192_s25, 0 }
   0x8   : > { %p183_p3 = scmp.eq.s32.totalorder %s5092_s26, 1  ;;  %p5093_p5 = scmp.ge.s32.totalorder %s6125_s24, 1 }
   0x9   : > { %p6201_p4 = por %p6968_p1, %p69_p0  ;;  %p190_p7 = scmp.lt.s32.totalorder %s6125_s24, 3 }
   0xa   : > { %p6206_p6 = por %p183_p3, %p69_p0  ;;  %s6127_s30 = smov [#allocation5]  }
   0xb   : > { %s6971_s27 = scalar_select %p6201_p4, 1, 0 }
   0xc   : > { %s6972_s28 = scalar_select %p6206_p6, 1, 0 }
   0xd   : > { %p6211_p8 = pnand %p5093_p5, %p190_p7  ;;  %s202_s7 = sshll.u32 %s6127_s30, 4  ;;  %s6215_s7 = int_to_ptr.vmem [resolvable:$true] %s202_s7 }
   0xe   : > { %s6227_s9 = sadd.s32 1, %s6125_s24   ;;  %s56_s10 = sadd.s32 1, %s6121_s23 }
   0xf   : > { %s6973_s29 = scalar_select %p6211_p8, 1, 0 }
  0x10   : > { %p5868_p9 = pneg %p6211_p8  ;;  %s53_s11 = ssub.s32 %s6125_s24, %s6227_s9 }
  0x11   : > { %s5997_s14 = scalar_lea.hbm %s6963_s2, 4096 }
  0x12   : > { %p6222_p11 = pnand %p5868_p9, %p6968_p1  ;;  %p5998_p12 = scmp.ne.s32.totalorder %s6963_s2, %s5997_s14 }
  0x13   : > { %p6004_p5 = scmp.lt.u32.totalorder %s5997_s14, %s6963_s2 }
  0x14   : > { %p5999_p13 = pneg %p6222_p11 }
  0x16   : > { %p6000_p0 = pnand %p5999_p13, %p5998_p12 }
  0x18   : > { %p6001_p3 = pneg %p6000_p0 }
  0x1a   : > { %p6006_p7 = pnand %p6004_p5, %p6001_p3 }
  0x1c   : > { %6009 = shalt.err (!%p6006_p7)
}
  0x1d   : > { %s6010_s19 = scalar_lea.vmem %s6215_s7, 4096  ;;  %p6018_p2 = scmp.lt.s32.totalorder %s6215_s7, %s6215_s7 }
  0x1e   : > { %p6011_p9 = scmp.ne.s32.totalorder %s6215_s7, %s6010_s19  ;;  %p6019_p6 = scmp.lt.s32.totalorder %s6010_s19, %s6010_s19 }
  0x20   : > { %p6013_p10 = pnand %p6011_p9, %p5999_p13  ;;  %p6020_p4 = por %p6019_p6, %p6018_p2 }
  0x22   : > { %p6014_p1 = pneg %p6013_p10 }
  0x24   : > { %p6021_p8 = pnand %p6020_p4, %p6014_p1 }
  0x26   : > { %6024 = shalt.err (!%p6021_p8)
}
  0x27   : > { %s6128_s20 = smov 128   ;;  %s6129_s26 = smov 8  }
  0x28   : > { %5871 = dma.hbm_to_vmem [thread:$0]  (!%p6222_p11), %s6963_s2, 4096, %s6215_s7, [#allocation6], %s6128_s20, %s6128_s20, %s6129_s26  }
  0x29   : > { %p54_p1 = scmp.eq.s32.totalorder %s53_s11, 0  ;;  %p63_p2 = scmp.ne.s32.totalorder %s6121_s23, %s6117_s22 }
  0x2a   : > { %p64_p4 = scmp.eq.s32.totalorder %s6125_s24, 0  ;;  %p5881_p6 = scmp.lt.s32.totalorder %s6125_s24, 2 }
  0x2b   : > { %s6261_s13 = scalar_select %p54_p1, %s6121_s23, %s56_s10  }
  0x2c   : > { %p65_p8 = por %p64_p4, %p63_p2  ;;  %p6975_p10 = scmp.eq.s32.totalorder %s6192_s25, 1 }
  0x2d   : > { %s234_s8 = sand.u32 1, %s6121_s23   ;;  %s5220_s15 = sshll.u32 %s6125_s24, 9 }
  0x2e   : > { %p6265_p12 = por %p6975_p10, %p63_p2  ;;  %s5096_s16 = sshll.u32 %s234_s8, 5 }
  0x2f   : > { %s6274_s19 = scalar_lea.hbm %s6962_s1, %s5220_s15  ;;  %s238_s7 = scalar_lea.vmem [#allocation2], %s5096_s16 }
  0x30   : > { %s245_s10 = sshll.u32 %s238_s7, 4  ;;  %p6276_p11 = pnand %p5881_p6, %p65_p8  ;;  %s6280_s10 = int_to_ptr.vmem [resolvable:$true] %s245_s10 }
  0x31   : > { %s6282_s30 = scalar_lea.sflag [#allocation3], %s234_s8  ;;  %s6025_s12 = scalar_lea.hbm %s6274_s19, 512 }
  0x32   : > { %p6026_p13 = scmp.ne.s32.totalorder %s6274_s19, %s6025_s12  ;;  %p6027_p0 = pneg %p6276_p11 }
  0x33   : > { %s6030_s17 = scalar_lea.hbm %s6962_s1, 1024  ;;  %p6031_p7 = scmp.lt.u32.totalorder %s6274_s19, %s6962_s1 }
  0x34   : > { %p6028_p3 = pnand %p6027_p0, %p6026_p13  ;;  %p6032_p9 = scmp.lt.u32.totalorder %s6030_s17, %s6025_s12 }
  0x35   : > { %p6034_p2 = scmp.lt.u32.totalorder %s6025_s12, %s6274_s19 }
  0x36   : > { %p6029_p5 = pneg %p6028_p3  ;;  %p6033_p1 = por %p6032_p9, %p6031_p7 }
  0x38   : > { %p6035_p4 = por %p6034_p2, %p6033_p1 }
  0x3a   : > { %p6036_p6 = pnand %p6035_p4, %p6029_p5 }
  0x3c   : > { %6039 = shalt.err (!%p6036_p6)
}
  0x3d   : > { %s6040_s8 = scalar_lea.vmem %s6280_s10, 512  ;;  %s6130_s15 = smov [#allocation2]  }
  0x3e   : > { %p6041_p8 = scmp.ne.s32.totalorder %s6280_s10, %s6040_s8  ;;  %s6045_s16 = sshll.u32 %s6130_s15, 4  ;;  %s6046_s16 = int_to_ptr.vmem [resolvable:$false] %s6045_s16 }
  0x3f   : > { %s6047_s18 = scalar_lea.vmem %s6046_s16, 1024  ;;  %p6048_p3 = scmp.lt.s32.totalorder %s6280_s10, %s6046_s16 }
  0x40   : > { %p6043_p10 = pnand %p6041_p8, %p6027_p0  ;;  %p6049_p7 = scmp.lt.s32.totalorder %s6047_s18, %s6040_s8 }
  0x42   : > { %p6044_p13 = pneg %p6043_p10  ;;  %p6050_p9 = por %p6049_p7, %p6048_p3 }
  0x44   : > { %p6051_p1 = pnand %p6050_p9, %p6044_p13 }
  0x46   : > { %6054 = shalt.err (!%p6051_p1)
}
  0x47   : > { %5875 = dma.hbm_to_vmem [thread:$0]  (!%p6276_p11), %s6274_s19, 512, %s6280_s10, %s6282_s30, %s6128_s20, %s6128_s20, %s6129_s26  }
  0x48   : > { %p6978_p0 = scmp.ne.s32.totalorder %s6973_s29, 0 }
  0x49   : > { %s6316_s12 = sand.u32 (!%p6978_p0), 1, %s6117_s22   ;;  %p6979_p5 = scmp.ne.s32.totalorder (!%p6978_p0), %s6971_s27, 0 }
  0x4a   : > { %257 = sbr.rel (%p6978_p0) target bundleno = 5927 (0x1727), region = 44  ;;  %s5100_s17 = sshll.u32 (!%p6978_p0), %s6316_s12, 5 }
  0x4b   : > { %s260_s7 = scalar_lea.sflag (!%p6978_p0), [#allocation3], %s6316_s12  ;;  %s6322_s11 = scalar_lea.vmem (!%p6978_p0), [#allocation2], %s5100_s17 }
  0x51   : > { %6100 = dma.done.wait (%p6979_p5), %s260_s7, 512  }
  0x52   : > { %6102 = vsyncadd (%p6979_p5), %s260_s7, 4294966784  ;;  %p6980_p11 = scmp.eq.s32.totalorder %s6192_s25, 0 }
  0x54   : > { %6104 = dma.done.wait (%p6980_p11), [#allocation6], 4096   ;;  %p6981_p2 = pmov %p6980_p11 }
  0x55   : > { %s5103_s29 = sshll.u32 %s6192_s25, 2  ;;  %v6131_v0 = vmov 0.0   ;;  %vm6132_vm0 = vmmov 0   ;;  %vm349_vm1 = vcmask 261120   ;;  %vm363_vm2 = vcmask 523264   ;;  %v6394_v9 = vld [vmem:[%s6964_s3] sm:$0xff] }
  0x56   : > { %6106 = vsyncadd (%p6981_p2), [#allocation6], 4294963200  ;;  %5398 = vmatprep.subr.mxu0 %v6131_v0  ;;  %5403 = vmatprep.subr.mxu1 %v6131_v0  ;;  %p302_p4 = scmp.lt.s32.totalorder %s5103_s29, 7  ;;  %vm332_vm3 = vcmask 64512   ;;  %v6408_v18 = vld [vmem:[%s6966_s5 + $0x4] ss:$0 sm:$0xff] }
  0x57   : > { %5400 = vmatprep.mubr.msk.f32.mxu0 %vm6132_vm0, %v6131_v0  ;;  %5405 = vmatprep.mubr.msk.f32.mxu1 %vm6132_vm0, %v6131_v0  ;;  %v6423_v57 = vld [vmem:[%s6322_s11] sm:$0xff]  ;;  %v6431_v61 = vld [vmem:[%s6322_s11 + $0x10] sm:$0xff]  ;;  %v314_v63 = vld [vmem:[%s6322_s11 + $0x8] sm:$0xff]  ;;  %s5221_s20 = sshll.u32 %s6192_s25, 9  ;;  %s4984_s25 = scalar_lea.sflag [#allocation4], %s6316_s12 }
  0x58   : > { %s6989_s29 = smov (!%p302_p4, %s5103_s29), 7  ;;  %s6133_s30 = smov [#allocation7]  }
  0x59   : > { %s5104_s27 = sshll.u32 %s6989_s29, 3  ;;  %s300_s29 = scalar_lea.vmem [#allocation7], %s5100_s17 }
  0x5a   : > { %s305_s19 = scalar_lea.vmem %s6961_s0, %s5104_s27  ;;  %s4997_s27 = sshll.u32 %s300_s29, 4  ;;  %s6910_s27 = int_to_ptr.vmem [resolvable:$true] %s4997_s27 }
  0x5b   : > { %v6342_v1 = vld [vmem:[%s305_s19] sm:$0xff]  ;;  %v6344_v2 = vld [vmem:[%s305_s19 + $0x8] sm:$0xff]  ;;  %v6346_v3 = vld [vmem:[%s305_s19 + $0x10] sm:$0xff]  ;;  %s6915_s17 = scalar_lea.hbm %s6967_s6, %s5221_s20  ;;  %s6055_s10 = scalar_lea.vmem %s6910_s27, 512 }
  0x5c   : > { %v6350_v4 = vsel %vm349_vm1, %v6342_v1, 0.0  ;;  %v6354_v5 = vsel %vm349_vm1, %v6344_v2, 0.0  ;;  %v6356_v6 = vld [vmem:[%s305_s19 + $0x18] sm:$0xff]  ;;  %v6365_v7 = vsel %vm349_vm1, %v6346_v3, 0.0  ;;  %p6056_p6 = scmp.ne.s32.totalorder %s6910_s27, %s6055_s10  ;;  %s6059_s8 = sshll.u32 %s6133_s30, 4  ;;  %s6060_s8 = int_to_ptr.vmem [resolvable:$false] %s6059_s8 }
  0x5d   : > { %5399 = vmatpush3.xpose.msk.msra.mxu0 %vm363_vm2, %v6350_v4  ;;  %5404 = vmatpush3.xpose.msk.msra.mxu1 %vm363_vm2, %v6354_v5  ;;  %v6370_v8 = vsel %vm349_vm1, %v6356_v6, 0.0  ;;  %s6061_s15 = scalar_lea.vmem %s6060_s8, 1024  ;;  %p6062_p13 = scmp.lt.s32.totalorder %s6910_s27, %s6060_s8 }
  0x5e   : > { %5408 = vmatprep.subr.mxu0 %v6131_v0  ;;  %5413 = vmatprep.subr.mxu1 %v6131_v0  ;;  %p6057_p8 = pnand %p6056_p6, %p6265_p12  ;;  %p6063_p3 = scmp.lt.s32.totalorder %s6061_s15, %s6055_s10 }
  0x60   : > { %5401 = vmatmul.mubr.msk.f32.vlgmr.msra.gmra.mrb[0].mxu0 %vm363_vm2, %v6350_v4  ;;  %5406 = vmatmul.mubr.msk.f32.vlgmr.msra.gmra.mrb[0].mxu1 %vm363_vm2, %v6354_v5  ;;  %p6058_p10 = pneg %p6057_p8  ;;  %p6064_p7 = por %p6063_p3, %p6062_p13 }
  0x61   : > { %5409 = vmatpush3.xpose.msk.msra.mxu0 %vm363_vm2, %v6365_v7  ;;  %5414 = vmatpush3.xpose.msk.msra.mxu1 %vm363_vm2, %v6370_v8 }
  0x62   : > { %5410 = vmatprep.mubr.msk.f32.mxu0 %vm6132_vm0, %v6131_v0  ;;  %5415 = vmatprep.mubr.msk.f32.mxu1 %vm6132_vm0, %v6131_v0  ;;  %p6065_p9 = pnand %p6064_p7, %p6058_p10 }
  0x63   : > { %5426 = vmatprep.subr.mxu1 %v6131_v0  ;;  %5418 = vmatprep.subr.mxu0 %v6394_v9 }
  0x64   : > { %5411 = vmatmul.mubr.msk.f32.vlgmr.msra.gmra.mrb[2].mxu0 %vm363_vm2, %v6365_v7  ;;  %5416 = vmatmul.mubr.msk.f32.vlgmr.msra.gmra.mrb[2].mxu1 %vm363_vm2, %v6370_v8 }
  0x65   : > { %5428 = vmatprep.mubr.msk.f32.mxu1 %vm6132_vm0, %v6131_v0  ;;  %5419 = vmatpush3.msra.mxu0 %v6394_v9 }
  0x66   : > { %5436 = vmatprep.subr.mxu0 %v6131_v0 }
 0x133   : > { %v433_v10 = vpop.f32.mrb[0].mxu0  ;;  %v506_v11 = vpop.f32.mrb[0].mxu1 }
 0x134   : > { %v5402_v12 = vpop.f32.mrb[1].mxu0  ;;  %v5407_v13 = vpop.f32.mrb[1].mxu1  ;;  %5420 = vmatprep.mubr.msk.f32.mxu0 %vm332_vm3, %v433_v10 }
 0x135   : > { %5421 = vmatmul.mubr.msk.f32.vlgmr.msra.gmra.mrb[4].mxu0 %vm332_vm3, %v506_v11  ;;  %v316_v12 = vld [vmem:[%s6322_s11 + $0x18] sm:$0xff]  ;;  %v354_v13 = vld [vmem:[#allocation5] sm:$0xff] }
 0x137   : > { %v579_v14 = vpop.f32.mrb[2].mxu0  ;;  %v652_v15 = vpop.f32.mrb[2].mxu1 }
 0x138   : > { %5423 = vmatprep.mubr.msk.f32.mxu0 %vm332_vm3, %v579_v14  ;;  %v5412_v16 = vpop.f32.mrb[3].mxu0  ;;  %v5417_v17 = vpop.f32.mrb[3].mxu1 }
 0x139   : > { %5424 = vmatmul.mubr.msk.f32.gmra.mrb[6].mxu0 %vm332_vm3, %v652_v15  ;;  %v356_v17 = vld [vmem:[#allocation5 + $0x10] sm:$0xff] }
 0x13a   : > { %5438 = vmatprep.mubr.msk.f32.mxu0 %vm6132_vm0, %v6131_v0 }
 0x208   : > { %v5422_v19 = vpop.f32.mrb[4].mxu0 }
 0x209   : > { %v734_v20 = vpop.f32.mrb[5].mxu0  ;;  %v740_v22 = vadd.f32 %v5422_v19, %v6408_v18  ;;  %v357_v19 = vld [vmem:[#allocation5 + $0x18] sm:$0xff] }
 0x20a   : > { %v735_v21 = vadd.f32 %v6408_v18, %v734_v20  ;;  %v5784_v20 = vpack.c.bf16 %v357_v19, %v356_v17 }
 0x20b   : > { %v756_v29 = vsel %vm332_vm3, %v740_v22, -inf }
 0x20c   : > { %v5425_v23 = vpop.f32.mrb[6].mxu0  ;;  %v753_v24 = vsel %vm332_vm3, %v735_v21, -inf }
 0x20d   : > { %v744_v25 = vpop.f32.mrb[7].mxu0  ;;  %754 = vmax.xlane.f32.xlu0 %v753_v24  ;;  %v750_v26 = vadd.f32 %v5425_v23, %v6408_v18 }
 0x20e   : > { %v745_v27 = vadd.f32 %v6408_v18, %v744_v25 }
 0x20f   : > { %v762_v30 = vsel %vm332_vm3, %v750_v26, -inf }
 0x210   : > { %v759_v28 = vsel %vm332_vm3, %v745_v27, -inf }
 0x211   : > { %760 = vmax.xlane.f32.xlu1 %v759_v28  ;;  %757 = vmax.xlane.f32.xlu0 %v756_v29  ;;  %v361_v28 = vld [vmem:[#allocation5 + $0x38] sm:$0xff] }
 0x215   : > { %763 = vmax.xlane.f32.xlu1 %v762_v30  ;;  %v336_v30 = vsel %vm332_vm3, %v314_v63, 0.0 }
 0x29a   : > { %v755_v31 = vpop.xlane.xlu0 %754 }
 0x29b   : > { %v765_v32 = vsub.f32 %v735_v21, %v755_v31  ;;  %v358_v21 = vld [vmem:[#allocation5 + $0x20] sm:$0xff]  ;;  %v333_v31 = vsel %vm332_vm3, %v6423_v57, 0.0 }
 0x29d   : > { %v769_v33 = vmul.f32 1.442695, %v765_v32  ;;  %v339_v32 = vsel %vm332_vm3, %v6431_v61, 0.0 }
 0x29e   : > { %v761_v34 = vpop.xlane.xlu1 %760  ;;  %v758_v35 = vpop.xlane.xlu0 %757 }
 0x29f   : > { %5923 = vpow2.f32 %v769_v33  ;;  %v767_v36 = vsub.f32 %v745_v27, %v761_v34  ;;  %v766_v37 = vsub.f32 %v740_v22, %v758_v35  ;;  %v359_v22 = vld [vmem:[#allocation5 + $0x28] sm:$0xff]  ;;  %v342_v33 = vsel %vm332_vm3, %v316_v12, 0.0 }
 0x2a1   : > { %v773_v38 = vmul.f32 1.442695, %v767_v36  ;;  %v771_v39 = vmul.f32 1.442695, %v766_v37 }
 0x2a2   : > { %v764_v40 = vpop.xlane.xlu1 %763 }
 0x2a3   : > { %5925 = vpow2.f32 %v773_v38  ;;  %v768_v41 = vsub.f32 %v750_v26, %v764_v40 }
 0x2a4   : > { %5927 = vpow2.f32 %v771_v39 }
 0x2a5   : > { %v775_v42 = vmul.f32 1.442695, %v768_v41 }
 0x2a7   : > { %5929 = vpow2.f32 %v775_v42 }
 0x2a9   : > { %v5924_v43 = vpop.eup %5923 }
 0x2aa   : > { %v777_v44 = vsel %vm332_vm3, %v5924_v43, 0.0 }
 0x2ab   : > { %778 = vadd.xlane.f32.xlu0 %v777_v44 }
 0x2ad   : > { %v5926_v45 = vpop.eup %5925 }
 0x2ae   : > { %v5928_v46 = vpop.eup %5927  ;;  %v783_v47 = vsel %vm332_vm3, %v5926_v45, 0.0 }
 0x2af   : > { %784 = vadd.xlane.f32.xlu0 %v783_v47  ;;  %v780_v48 = vsel %vm332_vm3, %v5928_v46, 0.0 }
 0x2b0   : > { %781 = vadd.xlane.f32.xlu1 %v780_v48 }
 0x2b1   : > { %v5930_v49 = vpop.eup %5929 }
 0x2b2   : > { %v786_v50 = vsel %vm332_vm3, %v5930_v49, 0.0 }
 0x2b3   : > { %334 = vadd.xlane.f32.xlu0 %v333_v31 }
 0x2b4   : > { %787 = vadd.xlane.f32.xlu1 %v786_v50  ;;  %v5130_v50 = vld [vmem:[%s6966_s5] ss:$0 sm:$0xff] }
 0x2b7   : > { %340 = vadd.xlane.f32.xlu0 %v339_v32 }
 0x2b8   : > { %337 = vadd.xlane.f32.xlu1 %v336_v30 }
 0x2bc   : > { %343 = vadd.xlane.f32.xlu1 %v342_v33 }
 0x338   : > { %v779_v51 = vpop.xlane.xlu0 %778 }
 0x339   : > { %5931 = vrcp.f32 %v779_v51 }
 0x33c   : > { %v785_v52 = vpop.xlane.xlu0 %784 }
 0x33d   : > { %v782_v53 = vpop.xlane.xlu1 %781  ;;  %5933 = vrcp.f32 %v785_v52 }
 0x33e   : > { %5935 = vrcp.f32 %v782_v53 }
 0x340   : > { %v335_v47 = vpop.xlane.xlu0 %334 }
 0x341   : > { %v788_v54 = vpop.xlane.xlu1 %787 }
 0x342   : > { %5937 = vrcp.f32 %v788_v54 }
 0x343   : > { %v5932_v55 = vpop.eup %5931 }
 0x344   : > { %v793_v56 = vmul.f32 %v5932_v55, %v5924_v43  ;;  %v341_v48 = vpop.xlane.xlu0 %340 }
 0x346   : > { %5427 = vmatpush3.msra.mxu1 %v793_v56 }
 0x347   : > { %v5934_v58 = vpop.eup %5933  ;;  %5429 = vmatmul.mubr.msk.f32.vlgmr.msra.gmra.mrb[4].mxu1 %vm332_vm3, %v6423_v57  ;;  %5431 = vmatprep.subr.mxu1 %v6131_v0 }
 0x348   : > { %v5936_v59 = vpop.eup %5935  ;;  %5433 = vmatprep.mubr.msk.f32.mxu1 %vm6132_vm0, %v6131_v0  ;;  %v795_v60 = vmul.f32 %v5934_v58, %v5926_v45 }
 0x349   : > { %v794_v62 = vmul.f32 %v5936_v59, %v5928_v46  ;;  %v338_v46 = vpop.xlane.xlu1 %337 }
 0x34a   : > { %5437 = vmatpush3.msra.mxu0 %v795_v60  ;;  %5939 = vrcp.f32 %v338_v46 }
 0x34b   : > { %5432 = vmatpush3.msra.mxu1 %v794_v62  ;;  %5439 = vmatmul.mubr.msk.f32.vlgmr.msra.gmra.mrb[8].mxu0 %vm332_vm3, %v6431_v61  ;;  %5941 = vrcp.f32 %v335_v47 }
 0x34c   : > { %v5938_v10 = vpop.eup %5937  ;;  %5434 = vmatmul.mubr.msk.f32.vlgmr.msra.gmra.mrb[6].mxu1 %vm332_vm3, %v314_v63  ;;  %5441 = vmatprep.subr.mxu1 %v6131_v0  ;;  %5943 = vrcp.f32 %v341_v48 }
 0x34d   : > { %v796_v11 = vmul.f32 %v5938_v10, %v5930_v49  ;;  %5443 = vmatprep.mubr.msk.f32.mxu1 %vm6132_vm0, %v6131_v0  ;;  %5446 = vmatprep.subr.mxu0 %v6131_v0  ;;  %v344_v49 = vpop.xlane.xlu1 %343 }
 0x34e   : > { %5447 = vmatpush3.msk.msra.mxu0 %vm349_vm1, %v6342_v1  ;;  %5448 = vmatprep.mubr.msk.f32.mxu0 %vm6132_vm0, %v6131_v0  ;;  %v355_v1 = vld [vmem:[#allocation5 + $0x8] sm:$0xff]  ;;  %5945 = vrcp.f32 %v344_v49 }
 0x34f   : > { %5442 = vmatpush3.msra.mxu1 %v796_v11  ;;  %5456 = vmatprep.subr.mxu0 %v6131_v0  ;;  %v5780_v14 = vpack.c.bf16 %v355_v1, %v354_v13 }
 0x350   : > { %5444 = vmatmul.mubr.msk.f32.vlgmr.msra.gmra.mrb[8].mxu1 %vm332_vm3, %v316_v12  ;;  %5451 = vmatprep.subr.mxu1 %v6131_v0 }
 0x351   : > { %5452 = vmatpush3.msk.msra.mxu1 %vm349_vm1, %v6344_v2  ;;  %5453 = vmatprep.mubr.msk.f32.mxu1 %vm6132_vm0, %v6131_v0 }
 0x352   : > { %5461 = vmatprep.subr.mxu1 %v6131_v0 }
 0x354   : > { %v6501_v51 = vpop.eup %5939 }
 0x355   : > { %v6503_v53 = vpop.eup %5941 }
 0x356   : > { %v6507_v60 = vpop.eup %5943 }
 0x358   : > { %v6509_v11 = vpop.eup %5945 }
 0x41a   : > { %v6454_v15 = vpop.f32.mrb[4].mxu1 }
 0x41b   : > { %v5430_v16 = vpop.f32.mrb[5].mxu1  ;;  %5449 = vmatmul.mubr.msk.f32.vlgmr.msra.gmra.mrb[10].mxu0 %vm332_vm3, %v6454_v15 }
 0x41c   : > { %5457 = vmatpush3.msk.msra.mxu0 %vm349_vm1, %v6346_v3  ;;  %5458 = vmatprep.mubr.msk.f32.mxu0 %vm6132_vm0, %v6131_v0  ;;  %v5788_v3 = vpack.c.bf16 %v359_v22, %v358_v21 }
 0x41d   : > { %5781 = vmatprep.subr.bf16.mxu0 %v5780_v14 }
 0x41e   : > { %v6462_v2 = vpop.f32.mrb[8].mxu0 }
 0x41f   : > { %v6464_v23 = vpop.f32.mrb[6].mxu1  ;;  %5459 = vmatmul.mubr.msk.f32.vlgmr.msra.gmra.mrb[12].mxu0 %vm332_vm3, %v6462_v2  ;;  %v5440_v24 = vpop.f32.mrb[9].mxu0 }
 0x420   : > { %v5435_v25 = vpop.f32.mrb[7].mxu1  ;;  %5454 = vmatmul.mubr.msk.f32.vlgmr.msra.gmra.mrb[10].mxu1 %vm332_vm3, %v6464_v23  ;;  %5783 = vmatpush3.bf16.msra.mxu0 %v5780_v14 }
 0x421   : > { %5462 = vmatpush3.msk.msra.mxu1 %vm349_vm1, %v6356_v6  ;;  %5463 = vmatprep.mubr.msk.f32.mxu1 %vm6132_vm0, %v6131_v0  ;;  %v360_v6 = vld [vmem:[#allocation5 + $0x30] sm:$0xff] }
 0x422   : > { %5785 = vmatprep.subr.bf16.mxu0 %v5784_v20  ;;  %5488 = vmatprep.subr.mxu1 %v6131_v0  ;;  %v5792_v29 = vpack.c.bf16 %v361_v28, %v360_v6 }
 0x423   : > { %v6475_v26 = vpop.f32.mrb[8].mxu1 }
 0x424   : > { %5464 = vmatmul.mubr.msk.f32.vlgmr.msra.gmra.mrb[12].mxu1 %vm332_vm3, %v6475_v26  ;;  %v5445_v27 = vpop.f32.mrb[9].mxu1  ;;  %5787 = vmatpush3.bf16.msra.mxu0 %v5784_v20 }
 0x425   : > { %5789 = vmatprep.subr.bf16.mxu0 %v5788_v3  ;;  %5490 = vmatprep.mubr.msk.f32.mxu1 %vm6132_vm0, %v6131_v0 }
 0x428   : > { %5791 = vmatpush3.bf16.msra.mxu0 %v5788_v3 }
 0x429   : > { %5793 = vmatprep.subr.bf16.mxu0 %v5792_v29 }
 0x42c   : > { %5795 = vmatpush3.bf16.msra.mxu0 %v5792_v29 }
 0x42d   : > { %5516 = vmatprep.subr.mxu0 %v6131_v0 }
 0x4ee   : > { %v1158_v34 = vpop.f32.mrb[10].mxu0 }
 0x4ef   : > { %v1159_v35 = vadd.f32 %v1158_v34, %v6350_v4  ;;  %v5450_v36 = vpop.f32.mrb[11].mxu0 }
 0x4f1   : > { %5482 = vmatprep.mubr.msk.f32.mxu0 %vm363_vm2, %v1159_v35 }
 0x4f2   : > { %v1304_v37 = vpop.f32.mrb[12].mxu0 }
 0x4f3   : > { %v1231_v38 = vpop.f32.mrb[10].mxu1  ;;  %v1305_v39 = vadd.f32 %v1304_v37, %v6365_v7  ;;  %v5460_v40 = vpop.f32.mrb[13].mxu0 }
 0x4f4   : > { %v1232_v41 = vadd.f32 %v1231_v38, %v6354_v5  ;;  %v5455_v42 = vpop.f32.mrb[11].mxu1 }
 0x4f6   : > { %5483 = vmatmul.mubr.msk.f32.vlgmr.msra.gmra.mrb[14].mxu0 %vm363_vm2, %v1232_v41 }
 0x4f7   : > { %v1377_v43 = vpop.f32.mrb[12].mxu1  ;;  %5485 = vmatprep.mubr.msk.f32.mxu0 %vm363_vm2, %v1305_v39 }
 0x4f8   : > { %v1378_v44 = vadd.f32 %v1377_v43, %v6370_v8  ;;  %v5465_v45 = vpop.f32.mrb[13].mxu1 }
 0x4fa   : > { %5486 = vmatmul.mubr.msk.f32.gmra.mrb[16].mxu0 %vm363_vm2, %v1378_v44 }
 0x4fb   : > { %5518 = vmatprep.mubr.msk.f32.mxu0 %vm6132_vm0, %v6131_v0 }
 0x5c9   : > { %v5484_v52 = vpop.f32.mrb[14].mxu0 }
 0x5ca   : > { %v1469_v54 = vadd.f32 %v5484_v52, %v5130_v50  ;;  %v1463_v55 = vpop.f32.mrb[15].mxu0 }
 0x5cb   : > { %v1464_v56 = vadd.f32 %v5130_v50, %v1463_v55 }
 0x5cc   : > { %v1483_v57 = vmul.f32 %v6501_v51, %v1469_v54 }
 0x5cd   : > { %v1482_v58 = vmul.f32 %v6503_v53, %v1464_v56  ;;  %v5487_v59 = vpop.f32.mrb[16].mxu0 }
 0x5ce   : > { %v1473_v61 = vpop.f32.mrb[17].mxu0  ;;  %v1479_v63 = vadd.f32 %v5487_v59, %v5130_v50  ;;  %v1487_v12 = vmax.f32 %v1483_v57, 0.0 }
 0x5cf   : > { %v1486_v62 = vmax.f32 %v1482_v58, 0.0  ;;  %v1474_v10 = vadd.f32 %v5130_v50, %v1473_v61 }
 0x5d0   : > { %v1485_v14 = vmul.f32 %v6509_v11, %v1479_v63  ;;  %v6520_v17 = vadd.f32 %v1487_v12, %v6354_v5 }
 0x5d1   : > { %v6512_v13 = vadd.f32 %v1486_v62, %v6350_v4  ;;  %v1484_v1 = vmul.f32 %v6507_v60, %v1474_v10 }
 0x5d2   : > { %v1489_v19 = vmax.f32 %v1485_v14, 0.0 }
 0x5d3   : > { %v1488_v16 = vmax.f32 %v1484_v1, 0.0  ;;  %5489 = vmatpush3.xpose.msk.msra.mxu1 %vm363_vm2, %v6512_v13 }
 0x5d4   : > { %5493 = vmatprep.subr.mxu1 %v6131_v0  ;;  %v6535_v5 = vadd.f32 %v1489_v19, %v6370_v8 }
 0x5d5   : > { %v6525_v4 = vadd.f32 %v1488_v16, %v6365_v7 }
 0x5d6   : > { %5491 = vmatmul.mubr.msk.f32.vlgmr.msra.gmra.mrb[14].mxu1 %vm363_vm2, %v6512_v13 }
 0x5d7   : > { %5494 = vmatpush3.xpose.msk.msra.mxu1 %vm363_vm2, %v6520_v17  ;;  %5495 = vmatprep.mubr.msk.f32.mxu1 %vm6132_vm0, %v6131_v0 }
 0x5d8   : > { %5498 = vmatprep.subr.mxu1 %v6131_v0 }
 0x5da   : > { %5496 = vmatmul.mubr.msk.f32.vlgmr.msra.gmra.mrb[16].mxu1 %vm363_vm2, %v6520_v17 }
 0x5db   : > { %5499 = vmatpush3.xpose.msk.msra.mxu1 %vm363_vm2, %v6525_v4  ;;  %5500 = vmatprep.mubr.msk.f32.mxu1 %vm6132_vm0, %v6131_v0 }
 0x5dc   : > { %5503 = vmatprep.subr.mxu1 %v6131_v0 }
 0x5de   : > { %5501 = vmatmul.mubr.msk.f32.vlgmr.msra.gmra.mrb[18].mxu1 %vm363_vm2, %v6525_v4 }
 0x5df   : > { %5504 = vmatpush3.xpose.msk.msra.mxu1 %vm363_vm2, %v6535_v5  ;;  %5505 = vmatprep.mubr.msk.f32.mxu1 %vm6132_vm0, %v6131_v0 }
 0x5e0   : > { %5508 = vmatprep.subr.mxu1 %v6394_v9 }
 0x5e2   : > { %5506 = vmatmul.mubr.msk.f32.vlgmr.msra.gmra.mrb[20].mxu1 %vm363_vm2, %v6535_v5 }
 0x5e3   : > { %5509 = vmatpush3.msra.mxu1 %v6394_v9 }
 0x5e4   : > { %5526 = vmatprep.subr.mxu1 %v6131_v0 }
 0x6a9   : > { %v1573_v7 = vpop.f32.mrb[14].mxu1 }
 0x6aa   : > { %v5492_v8 = vpop.f32.mrb[15].mxu1  ;;  %5510 = vmatprep.mubr.msk.f32.mxu1 %vm332_vm3, %v1573_v7 }
 0x6ad   : > { %v1646_v20 = vpop.f32.mrb[16].mxu1 }
 0x6ae   : > { %v5497_v21 = vpop.f32.mrb[17].mxu1  ;;  %5511 = vmatmul.mubr.msk.f32.vlgmr.msra.gmra.mrb[22].mxu1 %vm332_vm3, %v1646_v20 }
 0x6b1   : > { %v1719_v22 = vpop.f32.mrb[18].mxu1 }
 0x6b2   : > { %v5502_v24 = vpop.f32.mrb[19].mxu1  ;;  %5513 = vmatprep.mubr.msk.f32.mxu1 %vm332_vm3, %v1719_v22 }
 0x6b3   : > { %v1497_v24 = vld [vmem:[#allocation5 + $0x50] sm:$0xff] }
 0x6b5   : > { %v1792_v25 = vpop.f32.mrb[20].mxu1 }
 0x6b6   : > { %v5507_v3 = vpop.f32.mrb[21].mxu1  ;;  %5514 = vmatmul.mubr.msk.f32.gmra.mrb[24].mxu1 %vm332_vm3, %v1792_v25  ;;  %v1498_v25 = vld [vmem:[#allocation5 + $0x58] sm:$0xff] }
 0x6b7   : > { %5528 = vmatprep.mubr.msk.f32.mxu1 %vm6132_vm0, %v6131_v0 }
 0x781   : > { %v5512_v27 = vpop.f32.mrb[22].mxu1 }
 0x782   : > { %v1880_v6 = vadd.f32 %v5512_v27, %v6408_v18  ;;  %v1874_v28 = vpop.f32.mrb[23].mxu1  ;;  %v5800_v27 = vpack.c.bf16 %v1498_v25, %v1497_v24 }
 0x783   : > { %v1875_v29 = vadd.f32 %v6408_v18, %v1874_v28 }
 0x784   : > { %v1896_v30 = vsel %vm332_vm3, %v1880_v6, -inf }
 0x785   : > { %1897 = vmax.xlane.f32.xlu1 %v1896_v30  ;;  %v1893_v31 = vsel %vm332_vm3, %v1875_v29, -inf  ;;  %v1500_v30 = vld [vmem:[#allocation5 + $0x68] sm:$0xff] }
 0x786   : > { %1894 = vmax.xlane.f32.xlu0 %v1893_v31 }
 0x789   : > { %v5515_v32 = vpop.f32.mrb[24].mxu1 }
 0x78a   : > { %v1890_v33 = vadd.f32 %v5515_v32, %v6408_v18  ;;  %v1884_v34 = vpop.f32.mrb[25].mxu1 }
 0x78b   : > { %v1885_v35 = vadd.f32 %v6408_v18, %v1884_v34  ;;  %v1501_v34 = vld [vmem:[#allocation5 + $0x70] sm:$0xff] }
 0x78c   : > { %v1902_v36 = vsel %vm332_vm3, %v1890_v33, -inf }
 0x78d   : > { %1903 = vmax.xlane.f32.xlu1 %v1902_v36  ;;  %v1899_v37 = vsel %vm332_vm3, %v1885_v35, -inf }
 0x78e   : > { %1900 = vmax.xlane.f32.xlu0 %v1899_v37 }
 0x812   : > { %v1898_v38 = vpop.xlane.xlu1 %1897 }
 0x813   : > { %v1906_v39 = vsub.f32 %v1880_v6, %v1898_v38  ;;  %v1895_v40 = vpop.xlane.xlu0 %1894 }
 0x814   : > { %v1905_v41 = vsub.f32 %v1875_v29, %v1895_v40  ;;  %v1499_v29 = vld [vmem:[#allocation5 + $0x60] sm:$0xff] }
 0x815   : > { %v1911_v42 = vmul.f32 1.442695, %v1906_v39 }
 0x816   : > { %v1909_v43 = vmul.f32 1.442695, %v1905_v41 }
 0x817   : > { %5947 = vpow2.f32 %v1911_v42 }
 0x818   : > { %5949 = vpow2.f32 %v1909_v43 }
 0x81a   : > { %v1904_v44 = vpop.xlane.xlu1 %1903 }
 0x81b   : > { %v1908_v45 = vsub.f32 %v1890_v33, %v1904_v44  ;;  %v1901_v46 = vpop.xlane.xlu0 %1900  ;;  %v5804_v33 = vpack.c.bf16 %v1500_v30, %v1499_v29 }
 0x81c   : > { %v1907_v47 = vsub.f32 %v1885_v35, %v1901_v46  ;;  %v1502_v35 = vld [vmem:[#allocation5 + $0x78] sm:$0xff] }
 0x81d   : > { %v1915_v48 = vmul.f32 1.442695, %v1908_v45  ;;  %v5808_v36 = vpack.c.bf16 %v1502_v35, %v1501_v34 }
 0x81e   : > { %v1913_v49 = vmul.f32 1.442695, %v1907_v47 }
 0x81f   : > { %5951 = vpow2.f32 %v1915_v48 }
 0x820   : > { %5953 = vpow2.f32 %v1913_v49  ;;  %v5155_v49 = vld [vmem:[%s6966_s5 + $0x1] ss:$0 sm:$0xff] }
 0x821   : > { %v5948_v50 = vpop.eup %5947 }
 0x822   : > { %v5950_v52 = vpop.eup %5949  ;;  %v1920_v54 = vsel %vm332_vm3, %v5948_v50, 0.0 }
 0x823   : > { %1921 = vadd.xlane.f32.xlu1 %v1920_v54  ;;  %v1917_v55 = vsel %vm332_vm3, %v5950_v52, 0.0 }
 0x824   : > { %1918 = vadd.xlane.f32.xlu0 %v1917_v55 }
 0x829   : > { %v5952_v56 = vpop.eup %5951 }
 0x82a   : > { %v5954_v57 = vpop.eup %5953  ;;  %v1926_v58 = vsel %vm332_vm3, %v5952_v56, 0.0 }
 0x82b   : > { %1927 = vadd.xlane.f32.xlu1 %v1926_v58  ;;  %v1923_v59 = vsel %vm332_vm3, %v5954_v57, 0.0 }
 0x82c   : > { %1924 = vadd.xlane.f32.xlu0 %v1923_v59 }
 0x8b0   : > { %v1922_v61 = vpop.xlane.xlu1 %1921 }
 0x8b1   : > { %5955 = vrcp.f32 %v1922_v61  ;;  %v1919_v62 = vpop.xlane.xlu0 %1918 }
 0x8b2   : > { %5957 = vrcp.f32 %v1919_v62 }
 0x8b8   : > { %v1928_v63 = vpop.xlane.xlu1 %1927 }
 0x8b9   : > { %5959 = vrcp.f32 %v1928_v63  ;;  %v1925_v10 = vpop.xlane.xlu0 %1924 }
 0x8ba   : > { %5961 = vrcp.f32 %v1925_v10 }
 0x8bb   : > { %v5956_v12 = vpop.eup %5955 }
 0x8bc   : > { %v5958_v1 = vpop.eup %5957  ;;  %v1934_v16 = vmul.f32 %v5956_v12, %v5948_v50 }
 0x8bd   : > { %v1933_v14 = vmul.f32 %v5958_v1, %v5950_v52 }
 0x8bf   : > { %5517 = vmatpush3.msra.mxu0 %v1933_v14 }
 0x8c0   : > { %5519 = vmatmul.mubr.msk.f32.vlgmr.msra.gmra.mrb[18].mxu0 %vm332_vm3, %v6454_v15  ;;  %5521 = vmatprep.subr.mxu0 %v6131_v0  ;;  %v1495_v15 = vld [vmem:[#allocation5 + $0x40] sm:$0xff] }
 0x8c1   : > { %5522 = vmatpush3.msra.mxu0 %v1934_v16  ;;  %5523 = vmatprep.mubr.msk.f32.mxu0 %vm6132_vm0, %v6131_v0 }
 0x8c2   : > { %5531 = vmatprep.subr.mxu0 %v6131_v0 }
 0x8c3   : > { %v5960_v19 = vpop.eup %5959 }
 0x8c4   : > { %v5962_v7 = vpop.eup %5961  ;;  %5524 = vmatmul.mubr.msk.f32.vlgmr.msra.gmra.mrb[20].mxu0 %vm332_vm3, %v6464_v23  ;;  %v1936_v8 = vmul.f32 %v5960_v19, %v5952_v56 }
 0x8c5   : > { %v1935_v20 = vmul.f32 %v5962_v7, %v5954_v57  ;;  %5533 = vmatprep.mubr.msk.f32.mxu0 %vm6132_vm0, %v6131_v0 }
 0x8c6   : > { %5532 = vmatpush3.msra.mxu0 %v1936_v8 }
 0x8c7   : > { %5527 = vmatpush3.msra.mxu1 %v1935_v20  ;;  %5541 = vmatprep.subr.mxu0 %v6131_v0 }
 0x8c8   : > { %5529 = vmatmul.mubr.msk.f32.vlgmr.msra.gmra.mrb[26].mxu1 %vm332_vm3, %v6462_v2  ;;  %5534 = vmatmul.mubr.msk.f32.vlgmr.msra.gmra.mrb[22].mxu0 %vm332_vm3, %v6475_v26  ;;  %v1496_v2 = vld [vmem:[#allocation5 + $0x48] sm:$0xff] }
 0x8c9   : > { %5536 = vmatprep.subr.mxu1 %v6131_v0  ;;  %5542 = vmatpush3.msra.mxu0 %v6520_v17  ;;  %v5796_v23 = vpack.c.bf16 %v1496_v2, %v1495_v15 }
 0x8ca   : > { %5537 = vmatpush3.msra.mxu1 %v6512_v13  ;;  %5538 = vmatprep.mubr.msk.f32.mxu1 %vm6132_vm0, %v6131_v0 }
 0x8cb   : > { %5546 = vmatprep.subr.mxu1 %v6131_v0  ;;  %5543 = vmatprep.mubr.msk.f32.mxu0 %vm6132_vm0, %v6131_v0 }
 0x8cc   : > { %5551 = vmatprep.subr.mxu0 %v6131_v0 }
 0x993   : > { %v6595_v26 = vpop.f32.mrb[18].mxu0 }
 0x994   : > { %v5520_v21 = vpop.f32.mrb[19].mxu0  ;;  %5539 = vmatmul.mubr.msk.f32.vlgmr.msra.gmra.mrb[28].mxu1 %vm332_vm3, %v6595_v26 }
 0x995   : > { %5547 = vmatpush3.msra.mxu1 %v6525_v4  ;;  %5548 = vmatprep.mubr.msk.f32.mxu1 %vm6132_vm0, %v6131_v0 }
 0x996   : > { %5797 = vmatprep.subr.bf16.mxu1 %v5796_v23 }
 0x997   : > { %v6602_v22 = vpop.f32.mrb[20].mxu0 }
 0x998   : > { %v5525_v3 = vpop.f32.mrb[21].mxu0  ;;  %5544 = vmatmul.mubr.msk.f32.vlgmr.msra.gmra.mrb[24].mxu0 %vm332_vm3, %v6602_v22 }
 0x999   : > { %5552 = vmatpush3.msra.mxu0 %v6535_v5  ;;  %5553 = vmatprep.mubr.msk.f32.mxu0 %vm6132_vm0, %v6131_v0 }
 0x99a   : > { %5578 = vmatprep.subr.mxu0 %v6131_v0 }
 0x99b   : > { %v6610_v6 = vpop.f32.mrb[26].mxu1  ;;  %v6612_v28 = vpop.f32.mrb[22].mxu0 }
 0x99c   : > { %v5530_v31 = vpop.f32.mrb[27].mxu1  ;;  %v5535_v32 = vpop.f32.mrb[23].mxu0  ;;  %5549 = vmatmul.mubr.msk.f32.vlgmr.msra.gmra.mrb[30].mxu1 %vm332_vm3, %v6610_v6  ;;  %5554 = vmatmul.mubr.msk.f32.vlgmr.msra.gmra.mrb[26].mxu0 %vm332_vm3, %v6612_v28 }
 0x99d   : > { %5799 = vmatpush3.bf16.msra.mxu1 %v5796_v23  ;;  %5580 = vmatprep.mubr.msk.f32.mxu0 %vm6132_vm0, %v6131_v0 }
 0x99e   : > { %5801 = vmatprep.subr.bf16.mxu1 %v5800_v27 }
 0x9a1   : > { %5803 = vmatpush3.bf16.msra.mxu1 %v5800_v27 }
 0x9a2   : > { %5805 = vmatprep.subr.bf16.mxu1 %v5804_v33 }
 0x9a5   : > { %5807 = vmatpush3.bf16.msra.mxu1 %v5804_v33 }
 0x9a6   : > { %5809 = vmatprep.subr.bf16.mxu1 %v5808_v36 }
 0x9a9   : > { %5811 = vmatpush3.bf16.msra.mxu1 %v5808_v36 }
 0x9aa   : > { %5606 = vmatprep.subr.mxu1 %v6131_v0 }
 0xa67   : > { %v2286_v37 = vpop.f32.mrb[28].mxu1 }
 0xa68   : > { %v2287_v38 = vadd.f32 %v2286_v37, %v6512_v13  ;;  %v5540_v39 = vpop.f32.mrb[29].mxu1 }
 0xa6a   : > { %5572 = vmatprep.mubr.msk.f32.mxu1 %vm363_vm2, %v2287_v38 }
 0xa6b   : > { %v2359_v40 = vpop.f32.mrb[24].mxu0 }
 0xa6c   : > { %v2360_v41 = vadd.f32 %v2359_v40, %v6520_v17  ;;  %v5545_v42 = vpop.f32.mrb[25].mxu0 }
 0xa6e   : > { %5573 = vmatmul.mubr.msk.f32.vlgmr.msra.gmra.mrb[32].mxu1 %vm363_vm2, %v2360_v41 }
 0xa6f   : > { %v2432_v43 = vpop.f32.mrb[30].mxu1  ;;  %v2505_v44 = vpop.f32.mrb[26].mxu0 }
 0xa70   : > { %v2433_v45 = vadd.f32 %v2432_v43, %v6525_v4  ;;  %v2506_v46 = vadd.f32 %v2505_v44, %v6535_v5  ;;  %v5550_v47 = vpop.f32.mrb[31].mxu1  ;;  %v5555_v48 = vpop.f32.mrb[27].mxu0 }
 0xa72   : > { %5575 = vmatprep.mubr.msk.f32.mxu1 %vm363_vm2, %v2433_v45 }
 0xa73   : > { %5576 = vmatmul.mubr.msk.f32.gmra.mrb[34].mxu1 %vm363_vm2, %v2506_v46 }
 0xa74   : > { %5608 = vmatprep.mubr.msk.f32.mxu1 %vm6132_vm0, %v6131_v0 }
 0xb41   : > { %v5574_v50 = vpop.f32.mrb[32].mxu1 }
 0xb42   : > { %v2597_v52 = vadd.f32 %v5574_v50, %v5155_v49  ;;  %v2591_v54 = vpop.f32.mrb[33].mxu1 }
 0xb43   : > { %v2592_v55 = vadd.f32 %v5155_v49, %v2591_v54 }
 0xb44   : > { %v2611_v56 = vmul.f32 %v6501_v51, %v2597_v52 }
 0xb45   : > { %v2610_v57 = vmul.f32 %v6503_v53, %v2592_v55 }
 0xb46   : > { %v5577_v58 = vpop.f32.mrb[34].mxu1  ;;  %v2615_v63 = vmax.f32 %v2611_v56, 0.0 }
 0xb47   : > { %v2614_v59 = vmax.f32 %v2610_v57, 0.0  ;;  %v2601_v61 = vpop.f32.mrb[35].mxu1  ;;  %v2607_v12 = vadd.f32 %v5577_v58, %v5155_v49 }
 0xb48   : > { %v2602_v62 = vadd.f32 %v5155_v49, %v2601_v61  ;;  %v6644_v14 = vadd.f32 %v2615_v63, %v6520_v17 }
 0xb49   : > { %v6637_v10 = vadd.f32 %v2614_v59, %v6512_v13  ;;  %v2613_v16 = vmul.f32 %v6509_v11, %v2607_v12 }
 0xb4a   : > { %v2612_v1 = vmul.f32 %v6507_v60, %v2602_v62 }
 0xb4b   : > { %5579 = vmatpush3.xpose.msk.msra.mxu0 %vm363_vm2, %v6637_v10  ;;  %v2617_v13 = vmax.f32 %v2613_v16, 0.0 }
 0xb4c   : > { %5583 = vmatprep.subr.mxu0 %v6131_v0  ;;  %v2616_v19 = vmax.f32 %v2612_v1, 0.0 }
 0xb4d   : > { %v6665_v17 = vadd.f32 %v2617_v13, %v6535_v5 }
 0xb4e   : > { %5581 = vmatmul.mubr.msk.f32.vlgmr.msra.gmra.mrb[28].mxu0 %vm363_vm2, %v6637_v10  ;;  %v6655_v7 = vadd.f32 %v2616_v19, %v6525_v4 }
 0xb4f   : > { %5584 = vmatpush3.xpose.msk.msra.mxu0 %vm363_vm2, %v6644_v14  ;;  %5585 = vmatprep.mubr.msk.f32.mxu0 %vm6132_vm0, %v6131_v0 }
 0xb50   : > { %5588 = vmatprep.subr.mxu0 %v6131_v0 }
 0xb52   : > { %5586 = vmatmul.mubr.msk.f32.vlgmr.msra.gmra.mrb[30].mxu0 %vm363_vm2, %v6644_v14 }
 0xb53   : > { %5589 = vmatpush3.xpose.msk.msra.mxu0 %vm363_vm2, %v6655_v7  ;;  %5590 = vmatprep.mubr.msk.f32.mxu0 %vm6132_vm0, %v6131_v0 }
 0xb54   : > { %5593 = vmatprep.subr.mxu0 %v6131_v0 }
 0xb56   : > { %5591 = vmatmul.mubr.msk.f32.vlgmr.msra.gmra.mrb[32].mxu0 %vm363_vm2, %v6655_v7 }
 0xb57   : > { %5594 = vmatpush3.xpose.msk.msra.mxu0 %vm363_vm2, %v6665_v17  ;;  %5595 = vmatprep.mubr.msk.f32.mxu0 %vm6132_vm0, %v6131_v0 }
 0xb58   : > { %5598 = vmatprep.subr.mxu0 %v6394_v9 }
 0xb5a   : > { %5596 = vmatmul.mubr.msk.f32.vlgmr.msra.gmra.mrb[34].mxu0 %vm363_vm2, %v6665_v17 }
 0xb5b   : > { %5599 = vmatpush3.msra.mxu0 %v6394_v9 }
 0xb5c   : > { %5616 = vmatprep.subr.mxu0 %v6131_v0 }
 0xc21   : > { %v2701_v4 = vpop.f32.mrb[28].mxu0 }
 0xc22   : > { %v5582_v5 = vpop.f32.mrb[29].mxu0  ;;  %5600 = vmatprep.mubr.msk.f32.mxu0 %vm332_vm3, %v2701_v4 }
 0xc25   : > { %v2774_v8 = vpop.f32.mrb[30].mxu0 }
 0xc26   : > { %v5587_v20 = vpop.f32.mrb[31].mxu0  ;;  %5601 = vmatmul.mubr.msk.f32.vlgmr.msra.gmra.mrb[36].mxu0 %vm332_vm3, %v2774_v8 }
 0xc27   : > { %v2625_v20 = vld [vmem:[#allocation5 + $0x90] sm:$0xff] }
 0xc29   : > { %v2847_v15 = vpop.f32.mrb[32].mxu0 }
 0xc2a   : > { %v5592_v2 = vpop.f32.mrb[33].mxu0  ;;  %5603 = vmatprep.mubr.msk.f32.mxu0 %vm332_vm3, %v2847_v15  ;;  %v2626_v15 = vld [vmem:[#allocation5 + $0x98] sm:$0xff] }
 0xc2d   : > { %v2920_v23 = vpop.f32.mrb[34].mxu0 }
 0xc2e   : > { %v5597_v21 = vpop.f32.mrb[35].mxu0  ;;  %5604 = vmatmul.mubr.msk.f32.gmra.mrb[38].mxu0 %vm332_vm3, %v2920_v23  ;;  %v5816_v23 = vpack.c.bf16 %v2626_v15, %v2625_v20  ;;  %v5996_v20 = vld [vmem:[%s6966_s5 + $0x4] ss:$0 sm:$0xff] }
 0xc2f   : > { %5618 = vmatprep.mubr.msk.f32.mxu0 %vm6132_vm0, %v6131_v0 }
 0xcf9   : > { %v5602_v9 = vpop.f32.mrb[36].mxu0 }
 0xcfa   : > { %v3008_v24 = vadd.f32 %v5602_v9, %v6408_v18  ;;  %v3002_v25 = vpop.f32.mrb[37].mxu0 }
 0xcfb   : > { %v3003_v3 = vadd.f32 %v6408_v18, %v3002_v25  ;;  %v2628_v25 = vld [vmem:[#allocation5 + $0xa8] sm:$0xff] }
 0xcfc   : > { %v3024_v27 = vsel %vm332_vm3, %v3008_v24, -inf }
 0xcfd   : > { %3025 = vmax.xlane.f32.xlu1 %v3024_v27  ;;  %v3021_v29 = vsel %vm332_vm3, %v3003_v3, -inf }
 0xcfe   : > { %3022 = vmax.xlane.f32.xlu0 %v3021_v29 }
 0xd01   : > { %v5605_v30 = vpop.f32.mrb[38].mxu0 }
 0xd02   : > { %v3018_v31 = vadd.f32 %v5605_v30, %v6408_v18  ;;  %v3012_v32 = vpop.f32.mrb[39].mxu0  ;;  %v2629_v30 = vld [vmem:[#allocation5 + $0xb0] sm:$0xff] }
 0xd03   : > { %v3013_v33 = vadd.f32 %v6408_v18, %v3012_v32 }
 0xd04   : > { %v3030_v34 = vsel %vm332_vm3, %v3018_v31, -inf }
 0xd05   : > { %3031 = vmax.xlane.f32.xlu1 %v3030_v34  ;;  %v3027_v35 = vsel %vm332_vm3, %v3013_v33, -inf }
 0xd06   : > { %3028 = vmax.xlane.f32.xlu0 %v3027_v35 }
 0xd8a   : > { %v3026_v36 = vpop.xlane.xlu1 %3025 }
 0xd8b   : > { %v3034_v37 = vsub.f32 %v3008_v24, %v3026_v36  ;;  %v3023_v38 = vpop.xlane.xlu0 %3022  ;;  %v2627_v24 = vld [vmem:[#allocation5 + $0xa0] sm:$0xff] }
 0xd8c   : > { %v3033_v39 = vsub.f32 %v3003_v3, %v3023_v38  ;;  %v5820_v29 = vpack.c.bf16 %v2628_v25, %v2627_v24 }
 0xd8d   : > { %v3039_v40 = vmul.f32 1.442695, %v3034_v37 }
 0xd8e   : > { %v3037_v41 = vmul.f32 1.442695, %v3033_v39 }
 0xd8f   : > { %5963 = vpow2.f32 %v3039_v40 }
 0xd90   : > { %5965 = vpow2.f32 %v3037_v41 }
 0xd92   : > { %v3032_v42 = vpop.xlane.xlu1 %3031 }
 0xd93   : > { %v3036_v43 = vsub.f32 %v3018_v31, %v3032_v42  ;;  %v3029_v44 = vpop.xlane.xlu0 %3028  ;;  %v2630_v31 = vld [vmem:[#allocation5 + $0xb8] sm:$0xff] }
 0xd94   : > { %v3035_v45 = vsub.f32 %v3013_v33, %v3029_v44  ;;  %v5824_v32 = vpack.c.bf16 %v2630_v31, %v2629_v30 }
 0xd95   : > { %v3043_v46 = vmul.f32 1.442695, %v3036_v43 }
 0xd96   : > { %v3041_v18 = vmul.f32 1.442695, %v3035_v45  ;;  %v5180_v45 = vld [vmem:[%s6966_s5 + $0x2] ss:$0 sm:$0xff] }
 0xd97   : > { %5967 = vpow2.f32 %v3043_v46 }
 0xd98   : > { %5969 = vpow2.f32 %v3041_v18 }
 0xd99   : > { %v5964_v47 = vpop.eup %5963 }
 0xd9a   : > { %v5966_v48 = vpop.eup %5965  ;;  %v3048_v49 = vsel %vm332_vm3, %v5964_v47, 0.0 }
 0xd9b   : > { %3049 = vadd.xlane.f32.xlu1 %v3048_v49  ;;  %v3045_v50 = vsel %vm332_vm3, %v5966_v48, 0.0 }
 0xd9c   : > { %3046 = vadd.xlane.f32.xlu0 %v3045_v50 }
 0xda1   : > { %v5968_v52 = vpop.eup %5967 }
 0xda2   : > { %v5970_v54 = vpop.eup %5969  ;;  %v3054_v55 = vsel %vm332_vm3, %v5968_v52, 0.0 }
 0xda3   : > { %3055 = vadd.xlane.f32.xlu1 %v3054_v55  ;;  %v3051_v56 = vsel %vm332_vm3, %v5970_v54, 0.0 }
 0xda4   : > { %3052 = vadd.xlane.f32.xlu0 %v3051_v56 }
 0xe28   : > { %v3050_v57 = vpop.xlane.xlu1 %3049 }
 0xe29   : > { %5971 = vrcp.f32 %v3050_v57  ;;  %v3047_v58 = vpop.xlane.xlu0 %3046 }
 0xe2a   : > { %5973 = vrcp.f32 %v3047_v58 }
 0xe30   : > { %v3056_v59 = vpop.xlane.xlu1 %3055 }
 0xe31   : > { %5975 = vrcp.f32 %v3056_v59  ;;  %v3053_v61 = vpop.xlane.xlu0 %3052 }
 0xe32   : > { %5977 = vrcp.f32 %v3053_v61 }
 0xe33   : > { %v5972_v62 = vpop.eup %5971 }
 0xe34   : > { %v5974_v63 = vpop.eup %5973  ;;  %v3062_v1 = vmul.f32 %v5972_v62, %v5964_v47 }
 0xe35   : > { %v3061_v12 = vmul.f32 %v5974_v63, %v5966_v48 }
 0xe37   : > { %5607 = vmatpush3.msra.mxu1 %v3061_v12 }
 0xe38   : > { %5609 = vmatmul.mubr.msk.f32.vlgmr.msra.gmra.mrb[36].mxu1 %vm332_vm3, %v6595_v26  ;;  %5611 = vmatprep.subr.mxu1 %v6131_v0  ;;  %v2623_v26 = vld [vmem:[#allocation5 + $0x80] sm:$0xff] }
 0xe39   : > { %5612 = vmatpush3.msra.mxu1 %v3062_v1  ;;  %5613 = vmatprep.mubr.msk.f32.mxu1 %vm6132_vm0, %v6131_v0 }
 0xe3a   : > { %5621 = vmatprep.subr.mxu1 %v6131_v0 }
 0xe3b   : > { %v5976_v16 = vpop.eup %5975 }
 0xe3c   : > { %v5978_v19 = vpop.eup %5977  ;;  %5614 = vmatmul.mubr.msk.f32.vlgmr.msra.gmra.mrb[38].mxu1 %vm332_vm3, %v6602_v22  ;;  %v3064_v13 = vmul.f32 %v5976_v16, %v5968_v52  ;;  %v2624_v22 = vld [vmem:[#allocation5 + $0x88] sm:$0xff] }
 0xe3d   : > { %v3063_v4 = vmul.f32 %v5978_v19, %v5970_v54  ;;  %5623 = vmatprep.mubr.msk.f32.mxu1 %vm6132_vm0, %v6131_v0 }
 0xe3e   : > { %5622 = vmatpush3.msra.mxu1 %v3064_v13 }
 0xe3f   : > { %5617 = vmatpush3.msra.mxu0 %v3063_v4  ;;  %5631 = vmatprep.subr.mxu1 %v6131_v0 }
 0xe40   : > { %5619 = vmatmul.mubr.msk.f32.vlgmr.msra.gmra.mrb[40].mxu0 %vm332_vm3, %v6610_v6  ;;  %5624 = vmatmul.mubr.msk.f32.vlgmr.msra.gmra.mrb[40].mxu1 %vm332_vm3, %v6612_v28  ;;  %v5812_v6 = vpack.c.bf16 %v2624_v22, %v2623_v26 }
 0xe41   : > { %5626 = vmatprep.subr.mxu0 %v6131_v0  ;;  %5632 = vmatpush3.msra.mxu1 %v6644_v14 }
 0xe42   : > { %5627 = vmatpush3.msra.mxu0 %v6637_v10  ;;  %5628 = vmatprep.mubr.msk.f32.mxu0 %vm6132_vm0, %v6131_v0 }
 0xe43   : > { %5636 = vmatprep.subr.mxu0 %v6131_v0  ;;  %5633 = vmatprep.mubr.msk.f32.mxu1 %vm6132_vm0, %v6131_v0 }
 0xe44   : > { %5641 = vmatprep.subr.mxu1 %v6131_v0 }
 0xf0b   : > { %v6720_v28 = vpop.f32.mrb[36].mxu1 }
 0xf0c   : > { %v5610_v5 = vpop.f32.mrb[37].mxu1  ;;  %5629 = vmatmul.mubr.msk.f32.vlgmr.msra.gmra.mrb[42].mxu0 %vm332_vm3, %v6720_v28 }
 0xf0d   : > { %5637 = vmatpush3.msra.mxu0 %v6655_v7  ;;  %5638 = vmatprep.mubr.msk.f32.mxu0 %vm6132_vm0, %v6131_v0 }
 0xf0e   : > { %5813 = vmatprep.subr.bf16.mxu0 %v5812_v6 }
 0xf0f   : > { %v6727_v8 = vpop.f32.mrb[38].mxu1 }
 0xf10   : > { %v5615_v2 = vpop.f32.mrb[39].mxu1  ;;  %5634 = vmatmul.mubr.msk.f32.vlgmr.msra.gmra.mrb[42].mxu1 %vm332_vm3, %v6727_v8 }
 0xf11   : > { %5642 = vmatpush3.msra.mxu1 %v6665_v17  ;;  %5643 = vmatprep.mubr.msk.f32.mxu1 %vm6132_vm0, %v6131_v0 }
 0xf12   : > { %5668 = vmatprep.subr.mxu1 %v6131_v0 }
 0xf13   : > { %v6735_v21 = vpop.f32.mrb[40].mxu0  ;;  %v6737_v9 = vpop.f32.mrb[40].mxu1 }
 0xf14   : > { %v5620_v3 = vpop.f32.mrb[41].mxu0  ;;  %v5625_v27 = vpop.f32.mrb[41].mxu1  ;;  %5639 = vmatmul.mubr.msk.f32.vlgmr.msra.gmra.mrb[44].mxu0 %vm332_vm3, %v6735_v21  ;;  %5644 = vmatmul.mubr.msk.f32.vlgmr.msra.gmra.mrb[44].mxu1 %vm332_vm3, %v6737_v9 }
 0xf15   : > { %5815 = vmatpush3.bf16.msra.mxu0 %v5812_v6  ;;  %5670 = vmatprep.mubr.msk.f32.mxu1 %vm6132_vm0, %v6131_v0 }
 0xf16   : > { %5817 = vmatprep.subr.bf16.mxu0 %v5816_v23 }
 0xf19   : > { %5819 = vmatpush3.bf16.msra.mxu0 %v5816_v23 }
 0xf1a   : > { %5821 = vmatprep.subr.bf16.mxu0 %v5820_v29 }
 0xf1d   : > { %5823 = vmatpush3.bf16.msra.mxu0 %v5820_v29 }
 0xf1e   : > { %5825 = vmatprep.subr.bf16.mxu0 %v5824_v32 }
 0xf21   : > { %5827 = vmatpush3.bf16.msra.mxu0 %v5824_v32 }
 0xf22   : > { %5696 = vmatprep.subr.mxu0 %v6131_v0 }
 0xfdf   : > { %v3414_v33 = vpop.f32.mrb[42].mxu0 }
 0xfe0   : > { %v3415_v34 = vadd.f32 %v3414_v33, %v6637_v10  ;;  %v5630_v35 = vpop.f32.mrb[43].mxu0 }
 0xfe2   : > { %5662 = vmatprep.mubr.msk.f32.mxu0 %vm363_vm2, %v3415_v34 }
 0xfe3   : > { %v3487_v36 = vpop.f32.mrb[42].mxu1 }
 0xfe4   : > { %v3488_v37 = vadd.f32 %v3487_v36, %v6644_v14  ;;  %v5635_v38 = vpop.f32.mrb[43].mxu1 }
 0xfe6   : > { %5663 = vmatmul.mubr.msk.f32.vlgmr.msra.gmra.mrb[46].mxu0 %vm363_vm2, %v3488_v37 }
 0xfe7   : > { %v3560_v39 = vpop.f32.mrb[44].mxu0  ;;  %v3633_v40 = vpop.f32.mrb[44].mxu1 }
 0xfe8   : > { %v3561_v41 = vadd.f32 %v3560_v39, %v6655_v7  ;;  %v3634_v42 = vadd.f32 %v3633_v40, %v6665_v17  ;;  %v5640_v43 = vpop.f32.mrb[45].mxu0  ;;  %v5645_v44 = vpop.f32.mrb[45].mxu1 }
 0xfea   : > { %5665 = vmatprep.mubr.msk.f32.mxu0 %vm363_vm2, %v3561_v41 }
 0xfeb   : > { %5666 = vmatmul.mubr.msk.f32.gmra.mrb[48].mxu0 %vm363_vm2, %v3634_v42 }
 0xfec   : > { %5698 = vmatprep.mubr.msk.f32.mxu0 %vm6132_vm0, %v6131_v0 }
0x10b9   : > { %v5664_v46 = vpop.f32.mrb[46].mxu0 }
0x10ba   : > { %v3725_v18 = vadd.f32 %v5664_v46, %v5180_v45  ;;  %v3719_v47 = vpop.f32.mrb[47].mxu0 }
0x10bb   : > { %v3720_v48 = vadd.f32 %v5180_v45, %v3719_v47 }
0x10bc   : > { %v3739_v49 = vmul.f32 %v6501_v51, %v3725_v18 }
0x10bd   : > { %v3738_v50 = vmul.f32 %v6503_v53, %v3720_v48 }
0x10be   : > { %v5667_v52 = vpop.f32.mrb[48].mxu0  ;;  %v3743_v57 = vmax.f32 %v3739_v49, 0.0 }
0x10bf   : > { %v3742_v54 = vmax.f32 %v3738_v50, 0.0  ;;  %v3729_v55 = vpop.f32.mrb[49].mxu0  ;;  %v3735_v59 = vadd.f32 %v5667_v52, %v5180_v45 }
0x10c0   : > { %v3730_v56 = vadd.f32 %v5180_v45, %v3729_v55  ;;  %v6769_v62 = vadd.f32 %v3743_v57, %v6644_v14 }
0x10c1   : > { %v6762_v58 = vadd.f32 %v3742_v54, %v6637_v10  ;;  %v3741_v63 = vmul.f32 %v6509_v11, %v3735_v59 }
0x10c2   : > { %v3740_v61 = vmul.f32 %v6507_v60, %v3730_v56 }
0x10c3   : > { %5669 = vmatpush3.xpose.msk.msra.mxu1 %vm363_vm2, %v6762_v58  ;;  %v3745_v10 = vmax.f32 %v3741_v63, 0.0 }
0x10c4   : > { %5673 = vmatprep.subr.mxu1 %v6131_v0  ;;  %v3744_v12 = vmax.f32 %v3740_v61, 0.0 }
0x10c5   : > { %v6790_v14 = vadd.f32 %v3745_v10, %v6665_v17 }
0x10c6   : > { %5671 = vmatmul.mubr.msk.f32.vlgmr.msra.gmra.mrb[46].mxu1 %vm363_vm2, %v6762_v58  ;;  %v6780_v1 = vadd.f32 %v3744_v12, %v6655_v7  ;;  %v5995_v7 = vld [vmem:[%s6964_s3] sm:$0xff] }
0x10c7   : > { %5674 = vmatpush3.xpose.msk.msra.mxu1 %vm363_vm2, %v6769_v62  ;;  %5675 = vmatprep.mubr.msk.f32.mxu1 %vm6132_vm0, %v6131_v0 }
0x10c8   : > { %5678 = vmatprep.subr.mxu1 %v6131_v0 }
0x10ca   : > { %5676 = vmatmul.mubr.msk.f32.vlgmr.msra.gmra.mrb[48].mxu1 %vm363_vm2, %v6769_v62 }
0x10cb   : > { %5679 = vmatpush3.xpose.msk.msra.mxu1 %vm363_vm2, %v6780_v1  ;;  %5680 = vmatprep.mubr.msk.f32.mxu1 %vm6132_vm0, %v6131_v0 }
0x10cc   : > { %5683 = vmatprep.subr.mxu1 %v6131_v0 }
0x10ce   : > { %5681 = vmatmul.mubr.msk.f32.vlgmr.msra.gmra.mrb[50].mxu1 %vm363_vm2, %v6780_v1 }
0x10cf   : > { %5684 = vmatpush3.xpose.msk.msra.mxu1 %vm363_vm2, %v6790_v14  ;;  %5685 = vmatprep.mubr.msk.f32.mxu1 %vm6132_vm0, %v6131_v0 }
0x10d0   : > { %5688 = vmatprep.subr.mxu1 %v5995_v7 }
0x10d2   : > { %5686 = vmatmul.mubr.msk.f32.vlgmr.msra.gmra.mrb[52].mxu1 %vm363_vm2, %v6790_v14 }
0x10d3   : > { %5689 = vmatpush3.msra.mxu1 %v5995_v7 }
0x10d4   : > { %5706 = vmatprep.subr.mxu1 %v6131_v0 }
0x1199   : > { %v3829_v17 = vpop.f32.mrb[46].mxu1 }
0x119a   : > { %v5672_v16 = vpop.f32.mrb[47].mxu1  ;;  %5690 = vmatprep.mubr.msk.f32.mxu1 %vm332_vm3, %v3829_v17 }
0x119d   : > { %v3902_v19 = vpop.f32.mrb[48].mxu1 }
0x119e   : > { %v5677_v13 = vpop.f32.mrb[49].mxu1  ;;  %5691 = vmatmul.mubr.msk.f32.vlgmr.msra.gmra.mrb[54].mxu1 %vm332_vm3, %v3902_v19 }
0x11a1   : > { %v3975_v4 = vpop.f32.mrb[50].mxu1 }
0x11a2   : > { %v5682_v26 = vpop.f32.mrb[51].mxu1  ;;  %5693 = vmatprep.mubr.msk.f32.mxu1 %vm332_vm3, %v3975_v4  ;;  %v3753_v4 = vld [vmem:[#allocation5 + $0xd0] sm:$0xff] }
0x11a3   : > { %v3754_v26 = vld [vmem:[#allocation5 + $0xd8] sm:$0xff] }
0x11a5   : > { %v4048_v22 = vpop.f32.mrb[52].mxu1 }
0x11a6   : > { %v5687_v6 = vpop.f32.mrb[53].mxu1  ;;  %5694 = vmatmul.mubr.msk.f32.gmra.mrb[56].mxu1 %vm332_vm3, %v4048_v22 }
0x11a7   : > { %5708 = vmatprep.mubr.msk.f32.mxu1 %vm6132_vm0, %v6131_v0  ;;  %v5832_v6 = vpack.c.bf16 %v3754_v26, %v3753_v4 }
0x1271   : > { %v5692_v5 = vpop.f32.mrb[54].mxu1 }
0x1272   : > { %v4136_v15 = vadd.f32 %v5996_v20, %v5692_v5  ;;  %v4130_v2 = vpop.f32.mrb[55].mxu1 }
0x1273   : > { %v4131_v23 = vadd.f32 %v5996_v20, %v4130_v2  ;;  %v3756_v2 = vld [vmem:[#allocation5 + $0xe8] sm:$0xff] }
0x1274   : > { %v4152_v24 = vsel %vm332_vm3, %v4136_v15, -inf }
0x1275   : > { %4153 = vmax.xlane.f32.xlu1 %v4152_v24  ;;  %v4149_v25 = vsel %vm332_vm3, %v4131_v23, -inf }
0x1276   : > { %4150 = vmax.xlane.f32.xlu0 %v4149_v25 }
0x1279   : > { %v5695_v3 = vpop.f32.mrb[56].mxu1 }
0x127a   : > { %v4146_v27 = vadd.f32 %v5996_v20, %v5695_v3  ;;  %v4140_v29 = vpop.f32.mrb[57].mxu1  ;;  %v3757_v3 = vld [vmem:[#allocation5 + $0xf0] sm:$0xff] }
0x127b   : > { %v4141_v30 = vadd.f32 %v5996_v20, %v4140_v29  ;;  %v318_v29 = vld [vmem:[%s6965_s4] sm:$0xff] }
0x127c   : > { %v4158_v31 = vsel %vm332_vm3, %v4146_v27, -inf }
0x127d   : > { %4159 = vmax.xlane.f32.xlu1 %v4158_v31  ;;  %v4155_v32 = vsel %vm332_vm3, %v4141_v30, -inf  ;;  %v320_v31 = vld [vmem:[%s6965_s4 + $0x10] sm:$0xff] }
0x127e   : > { %4156 = vmax.xlane.f32.xlu0 %v4155_v32 }
0x1302   : > { %v4154_v33 = vpop.xlane.xlu1 %4153 }
0x1303   : > { %v4162_v34 = vsub.f32 %v4136_v15, %v4154_v33  ;;  %v4151_v35 = vpop.xlane.xlu0 %4150  ;;  %v3755_v15 = vld [vmem:[#allocation5 + $0xe0] sm:$0xff]  ;;  %v321_v33 = vld [vmem:[%s6965_s4 + $0x18] sm:$0xff] }
0x1304   : > { %v4161_v36 = vsub.f32 %v4131_v23, %v4151_v35  ;;  %v5836_v25 = vpack.c.bf16 %v3756_v2, %v3755_v15 }
0x1305   : > { %v4167_v37 = vmul.f32 1.442695, %v4162_v34  ;;  %v5848_v34 = vpack.c.bf16 %v321_v33, %v320_v31 }
0x1306   : > { %v4165_v38 = vmul.f32 1.442695, %v4161_v36 }
0x1307   : > { %5979 = vpow2.f32 %v4167_v37 }
0x1308   : > { %5981 = vpow2.f32 %v4165_v38 }
0x130a   : > { %v4160_v39 = vpop.xlane.xlu1 %4159 }
0x130b   : > { %v4164_v40 = vsub.f32 %v4146_v27, %v4160_v39  ;;  %v4157_v41 = vpop.xlane.xlu0 %4156  ;;  %v3758_v27 = vld [vmem:[#allocation5 + $0xf8] sm:$0xff] }
0x130c   : > { %v4163_v42 = vsub.f32 %v4141_v30, %v4157_v41  ;;  %v319_v30 = vld [vmem:[%s6965_s4 + $0x8] sm:$0xff] }
0x130d   : > { %v4171_v43 = vmul.f32 1.442695, %v4164_v40  ;;  %v5844_v32 = vpack.c.bf16 %v319_v30, %v318_v29 }
0x130e   : > { %v4169_v44 = vmul.f32 1.442695, %v4163_v42 }
0x130f   : > { %5983 = vpow2.f32 %v4171_v43 }
0x1310   : > { %5985 = vpow2.f32 %v4169_v44 }
0x1311   : > { %v5980_v45 = vpop.eup %5979 }
0x1312   : > { %v5982_v46 = vpop.eup %5981  ;;  %v4176_v18 = vsel %vm332_vm3, %v5980_v45, 0.0 }
0x1313   : > { %4177 = vadd.xlane.f32.xlu1 %v4176_v18  ;;  %v4173_v47 = vsel %vm332_vm3, %v5982_v46, 0.0  ;;  %v322_v18 = vld [vmem:[%s6965_s4 + $0x20] sm:$0xff] }
0x1314   : > { %4174 = vadd.xlane.f32.xlu0 %v4173_v47  ;;  %v323_v47 = vld [vmem:[%s6965_s4 + $0x28] sm:$0xff] }
0x1319   : > { %v5984_v48 = vpop.eup %5983 }
0x131a   : > { %v5986_v49 = vpop.eup %5985  ;;  %v4182_v50 = vsel %vm332_vm3, %v5984_v48, 0.0 }
0x131b   : > { %4183 = vadd.xlane.f32.xlu1 %v4182_v50  ;;  %v4179_v52 = vsel %vm332_vm3, %v5986_v49, 0.0  ;;  %v325_v50 = vld [vmem:[%s6965_s4 + $0x38] sm:$0xff] }
0x131c   : > { %4180 = vadd.xlane.f32.xlu0 %v4179_v52 }
0x13a0   : > { %v4178_v54 = vpop.xlane.xlu1 %4177 }
0x13a1   : > { %5987 = vrcp.f32 %v4178_v54  ;;  %v4175_v55 = vpop.xlane.xlu0 %4174  ;;  %v5205_v54 = vld [vmem:[%s6966_s5 + $0x3] ss:$0 sm:$0xff] }
0x13a2   : > { %5989 = vrcp.f32 %v4175_v55 }
0x13a8   : > { %v4184_v56 = vpop.xlane.xlu1 %4183 }
0x13a9   : > { %5991 = vrcp.f32 %v4184_v56  ;;  %v4181_v57 = vpop.xlane.xlu0 %4180 }
0x13aa   : > { %5993 = vrcp.f32 %v4181_v57 }
0x13ab   : > { %v5988_v59 = vpop.eup %5987 }
0x13ac   : > { %v5990_v61 = vpop.eup %5989  ;;  %v4190_v12 = vmul.f32 %v5988_v59, %v5980_v45 }
0x13ad   : > { %v4189_v63 = vmul.f32 %v5990_v61, %v5982_v46 }
0x13af   : > { %5697 = vmatpush3.msra.mxu0 %v4189_v63 }
0x13b0   : > { %5699 = vmatmul.mubr.msk.f32.vlgmr.msra.gmra.mrb[50].mxu0 %vm332_vm3, %v6720_v28  ;;  %5701 = vmatprep.subr.mxu0 %v6131_v0  ;;  %v3751_v28 = vld [vmem:[#allocation5 + $0xc0] sm:$0xff] }
0x13b1   : > { %5702 = vmatpush3.msra.mxu0 %v4190_v12  ;;  %5703 = vmatprep.mubr.msk.f32.mxu0 %vm6132_vm0, %v6131_v0 }
0x13b2   : > { %5711 = vmatprep.subr.mxu0 %v6131_v0 }
0x13b3   : > { %v5992_v10 = vpop.eup %5991 }
0x13b4   : > { %v5994_v7 = vpop.eup %5993  ;;  %5704 = vmatmul.mubr.msk.f32.vlgmr.msra.gmra.mrb[52].mxu0 %vm332_vm3, %v6727_v8  ;;  %v4192_v17 = vmul.f32 %v5992_v10, %v5984_v48  ;;  %v3752_v8 = vld [vmem:[#allocation5 + $0xc8] sm:$0xff]  ;;  %v5852_v48 = vpack.c.bf16 %v323_v47, %v322_v18 }
0x13b5   : > { %v4191_v16 = vmul.f32 %v5994_v7, %v5986_v49  ;;  %5713 = vmatprep.mubr.msk.f32.mxu0 %vm6132_vm0, %v6131_v0  ;;  %v324_v49 = vld [vmem:[%s6965_s4 + $0x30] sm:$0xff] }
0x13b6   : > { %5712 = vmatpush3.msra.mxu0 %v4192_v17  ;;  %v5856_v52 = vpack.c.bf16 %v325_v50, %v324_v49 }
0x13b7   : > { %5707 = vmatpush3.msra.mxu1 %v4191_v16  ;;  %5721 = vmatprep.subr.mxu0 %v6131_v0 }
0x13b8   : > { %5709 = vmatmul.mubr.msk.f32.vlgmr.msra.gmra.mrb[58].mxu1 %vm332_vm3, %v6735_v21  ;;  %5714 = vmatmul.mubr.msk.f32.vlgmr.msra.gmra.mrb[54].mxu0 %vm332_vm3, %v6737_v9  ;;  %v5828_v21 = vpack.c.bf16 %v3752_v8, %v3751_v28 }
0x13b9   : > { %5716 = vmatprep.subr.mxu1 %v6131_v0  ;;  %5722 = vmatpush3.msra.mxu0 %v6769_v62 }
0x13ba   : > { %5717 = vmatpush3.msra.mxu1 %v6762_v58  ;;  %5718 = vmatprep.mubr.msk.f32.mxu1 %vm6132_vm0, %v6131_v0 }
0x13bb   : > { %5726 = vmatprep.subr.mxu1 %v6131_v0  ;;  %5723 = vmatprep.mubr.msk.f32.mxu0 %vm6132_vm0, %v6131_v0 }
0x13bc   : > { %5731 = vmatprep.subr.mxu0 %v6131_v0 }
0x1483   : > { %v4259_v9 = vpop.f32.mrb[50].mxu0 }
0x1484   : > { %v5700_v19 = vpop.f32.mrb[51].mxu0  ;;  %5719 = vmatmul.mubr.msk.f32.vlgmr.msra.gmra.mrb[60].mxu1 %vm332_vm3, %v4259_v9 }
0x1485   : > { %5727 = vmatpush3.msra.mxu1 %v6780_v1  ;;  %5728 = vmatprep.mubr.msk.f32.mxu1 %vm6132_vm0, %v6131_v0 }
0x1486   : > { %5829 = vmatprep.subr.bf16.mxu1 %v5828_v21 }
0x1487   : > { %v4329_v13 = vpop.f32.mrb[52].mxu0 }
0x1488   : > { %v5705_v22 = vpop.f32.mrb[53].mxu0  ;;  %5724 = vmatmul.mubr.msk.f32.vlgmr.msra.gmra.mrb[56].mxu0 %vm332_vm3, %v4329_v13 }
0x1489   : > { %5732 = vmatpush3.msra.mxu0 %v6790_v14  ;;  %5733 = vmatprep.mubr.msk.f32.mxu0 %vm6132_vm0, %v6131_v0  ;;  %v5840_v0 = vpack.c.bf16 %v3758_v27, %v3757_v3 }
0x148a   : > { %5845 = vmatprep.subr.bf16.mxu0 %v5844_v32 }
0x148b   : > { %v4399_v5 = vpop.f32.mrb[58].mxu1  ;;  %v4469_v20 = vpop.f32.mrb[54].mxu0 }
0x148c   : > { %v5710_v23 = vpop.f32.mrb[59].mxu1  ;;  %v5715_v24 = vpop.f32.mrb[55].mxu0  ;;  %5729 = vmatmul.mubr.msk.f32.vlgmr.msra.gmra.mrb[62].mxu1 %vm332_vm3, %v4399_v5  ;;  %5734 = vmatmul.mubr.msk.f32.vlgmr.msra.gmra.mrb[58].mxu0 %vm332_vm3, %v4469_v20 }
0x148d   : > { %5831 = vmatpush3.bf16.msra.mxu1 %v5828_v21  ;;  %5847 = vmatpush3.bf16.msra.mxu0 %v5844_v32 }
0x148e   : > { %5833 = vmatprep.subr.bf16.mxu1 %v5832_v6  ;;  %5849 = vmatprep.subr.bf16.mxu0 %v5848_v34 }
0x1491   : > { %5835 = vmatpush3.bf16.msra.mxu1 %v5832_v6  ;;  %5851 = vmatpush3.bf16.msra.mxu0 %v5848_v34 }
0x1492   : > { %5837 = vmatprep.subr.bf16.mxu1 %v5836_v25  ;;  %5853 = vmatprep.subr.bf16.mxu0 %v5852_v48 }
0x1495   : > { %5839 = vmatpush3.bf16.msra.mxu1 %v5836_v25  ;;  %5855 = vmatpush3.bf16.msra.mxu0 %v5852_v48 }
0x1496   : > { %5841 = vmatprep.subr.bf16.mxu1 %v5840_v0  ;;  %5857 = vmatprep.subr.bf16.mxu0 %v5856_v52 }
0x1499   : > { %5843 = vmatpush3.bf16.msra.mxu1 %v5840_v0  ;;  %5859 = vmatpush3.bf16.msra.mxu0 %v5856_v52 }
0x1557   : > { %v4542_v35 = vpop.f32.mrb[60].mxu1 }
0x1558   : > { %v4543_v36 = vadd.f32 %v4542_v35, %v6762_v58  ;;  %v5720_v37 = vpop.f32.mrb[61].mxu1 }
0x155a   : > { %5752 = vmatprep.mubr.msk.f32.mxu1 %vm363_vm2, %v4543_v36 }
0x155b   : > { %v4615_v38 = vpop.f32.mrb[56].mxu0 }
0x155c   : > { %v4616_v39 = vadd.f32 %v4615_v38, %v6769_v62  ;;  %v5725_v40 = vpop.f32.mrb[57].mxu0 }
0x155e   : > { %5753 = vmatmul.mubr.msk.f32.vlgmr.msra.gmra.mrb[64].mxu1 %vm363_vm2, %v4616_v39 }
0x155f   : > { %v4688_v41 = vpop.f32.mrb[62].mxu1  ;;  %v4761_v42 = vpop.f32.mrb[58].mxu0 }
0x1560   : > { %v4689_v43 = vadd.f32 %v4688_v41, %v6780_v1  ;;  %v4762_v44 = vadd.f32 %v4761_v42, %v6790_v14  ;;  %v5730_v45 = vpop.f32.mrb[63].mxu1  ;;  %v5735_v46 = vpop.f32.mrb[59].mxu0 }
0x1562   : > { %5755 = vmatprep.mubr.msk.f32.mxu1 %vm363_vm2, %v4689_v43 }
0x1563   : > { %5756 = vmatmul.mubr.msk.f32.gmra.mrb[66].mxu1 %vm363_vm2, %v4762_v44 }
0x1631   : > { %v5754_v55 = vpop.f32.mrb[64].mxu1 }
0x1632   : > { %v4853_v56 = vadd.f32 %v5754_v55, %v5205_v54  ;;  %v4847_v57 = vpop.f32.mrb[65].mxu1 }
0x1633   : > { %v4848_v59 = vadd.f32 %v5205_v54, %v4847_v57 }
0x1634   : > { %v4867_v61 = vmul.f32 %v6501_v51, %v4853_v56 }
0x1635   : > { %v4866_v63 = vmul.f32 %v6503_v53, %v4848_v59 }
0x1636   : > { %v4871_v12 = vmax.f32 %v4867_v61, 0.0  ;;  %v5757_v10 = vpop.f32.mrb[66].mxu1 }
0x1637   : > { %v4870_v7 = vmax.f32 %v4866_v63, 0.0  ;;  %v4863_v17 = vadd.f32 %v5757_v10, %v5205_v54  ;;  %v4857_v16 = vpop.f32.mrb[67].mxu1 }
0x1638   : > { %v4858_v28 = vadd.f32 %v5205_v54, %v4857_v16  ;;  %v4875_v9 = vadd.f32 %v4871_v12, %v6769_v62 }
0x1639   : > { %v4874_v8 = vadd.f32 %v4870_v7, %v6762_v58  ;;  %v4869_v21 = vmul.f32 %v6509_v11, %v4863_v17  ;;  %v5210_v11 = vld [vmem:[%s6966_s5 + $0x5] ss:$0 sm:$0xff] }
0x163a   : > { %v4868_v19 = vmul.f32 %v6507_v60, %v4858_v28 }
0x163b   : > { %v4873_v13 = vmax.f32 %v4869_v21, 0.0  ;;  %5774 = vmatprep.mubr.msk.f32.mxu0 %vm363_vm2, %v4874_v8 }
0x163c   : > { %v4872_v51 = vmax.f32 %v4868_v19, 0.0  ;;  %5775 = vmatmul.mubr.msk.f32.vlgmr.msra.gmra.mrb[60].mxu0 %vm363_vm2, %v4875_v9 }
0x163d   : > { %v4877_v4 = vadd.f32 %v4873_v13, %v6790_v14 }
0x163e   : > { %v4876_v53 = vadd.f32 %v4872_v51, %v6780_v1 }
0x1640   : > { %5777 = vmatprep.mubr.msk.f32.mxu0 %vm363_vm2, %v4876_v53 }
0x1641   : > { %5778 = vmatmul.mubr.msk.f32.gmra.mrb[62].mxu0 %vm363_vm2, %v4877_v4 }
0x170f   : > { %v5776_v60 = vpop.f32.mrb[60].mxu0 }
0x1710   : > { %v4966_v58 = vadd.f32 %v5776_v60, %v5210_v11  ;;  %v4960_v62 = vpop.f32.mrb[61].mxu0 }
0x1711   : > { %v4961_v26 = vadd.f32 %v5210_v11, %v4960_v62 }
0x1712   : > { %4980 = vst.msk [vmem:[%s300_s29 + $0x8] sm:$0xff] %vm349_vm1, %v4966_v58 }
0x1713   : > { %4979 = vst.msk [vmem:[%s300_s29] sm:$0xff] %vm349_vm1, %v4961_v26 }
0x1714   : > { %v5779_v1 = vpop.f32.mrb[62].mxu0 }
0x1715   : > { %v4976_v14 = vadd.f32 %v5779_v1, %v5210_v11  ;;  %v4970_v22 = vpop.f32.mrb[63].mxu0 }
0x1716   : > { %v4971_v6 = vadd.f32 %v5210_v11, %v4970_v22 }
0x1717   : > { %4982 = vst.msk [vmem:[%s300_s29 + $0x18] sm:$0xff] %vm349_vm1, %v4976_v14 }
0x1718   : > { %4981 = vst.msk [vmem:[%s300_s29 + $0x10] sm:$0xff] %vm349_vm1, %v4971_v6 }
0x1719   : > { %6068 = shalt.err (!%p6065_p9)
}
0x171a   : > { %s6069_s16 = scalar_lea.hbm %s6915_s17, 512  ;;  %s6073_s11 = scalar_lea.hbm %s6967_s6, 1024 }
0x171b   : > { %p6070_p1 = scmp.ne.s32.totalorder %s6915_s17, %s6069_s16  ;;  %p6074_p11 = scmp.lt.u32.totalorder %s6915_s17, %s6967_s6 }
0x171c   : > { %p6075_p2 = scmp.lt.u32.totalorder %s6073_s11, %s6069_s16  ;;  %p6077_p6 = scmp.lt.u32.totalorder %s6069_s16, %s6915_s17 }
0x171d   : > { %p6071_p0 = pnand %p6070_p1, %p6265_p12 }
0x171e   : > { %p6076_p4 = por %p6075_p2, %p6074_p11 }
0x171f   : > { %p6072_p5 = pneg %p6071_p0 }
0x1720   : > { %p6078_p8 = por %p6077_p6, %p6076_p4 }
0x1722   : > { %p6079_p10 = pnand %p6078_p8, %p6072_p5 }
0x1724   : > { %6082 = shalt.err (!%p6079_p10)
}
0x1725   : > { %s6134_s26 = smov 128   ;;  %s6135_s19 = smov 8  }
0x1726   : > { %5866 = dma.vmem_to_hbm [thread:$0]  (%p6265_p12), %s6910_s27, 512, %s6915_s17, %s4984_s25, %s6134_s26, %s6134_s26, %s6135_s19  }
0x1727 PF: > { %s5012_s10 = sand.u32 1, %s6113_s21   ;;  %p6982_p13 = scmp.ne.s32.totalorder %s6972_s28, 0 }
0x1728   : > { %p6983_p3 = scmp.ge.s32.totalorder %s6125_s24, 2  ;;  %s5013_s30 = scalar_lea.sflag [#allocation4], %s5012_s10 }
0x172a   : > { %p5877_p7 = pnand %p6983_p3, %p6982_p13 }
0x172c   : > { %6108 = dma.done.wait (!%p5877_p7), %s5013_s30, 512  }
0x172d   : > { %6110 = vsyncadd (!%p5877_p7), %s5013_s30, 4294966784  ;;  %p20_p9 = scmp.ge.s32.totalorder %s6227_s9, 4   ;;  %s6984_s21 = smov %s6117_s22 }
0x172e   : > { %s6985_s22 = smov %s6121_s23  ;;  %s6986_s23 = smov %s6261_s13 }
0x172f   : > { %s6987_s24 = smov %s6227_s9  ;;  %22 = sbr.rel (!%p20_p9) target bundleno = 6 (0x6), region = 99 }
0x1736   :  { %5018 = vsyncpa [#allocation3], 1 }
0x1737   :  { %5020 = vsyncpa [#allocation3 + $0x1], 1 }
0x1738   :  { %5021 = vsyncpa [#allocation6], 1 }
0x1739   :  { %5022 = vsyncpa [#allocation4], 1 }
0x173a   :  { %5024 = vsyncpa [#allocation4 + $0x1], 1 }

</bundles_post_ra>
